<compile_context>
chip_gen: v7x
topology: tpu7x:2x2x1
jax: 0.10.0
libtpu: 0.0.40
codegen_flags: <defaults>
</compile_context>

<pallas_src>
import jax
import jax.numpy as jnp
from jax.experimental import pallas as pl
from jax.experimental.pallas import tpu as pltpu


# ----------------------------- kernel ---------------------------------------


def decoder_rnn_kernel(
    x_ref,      # (B, S, I)  f32  batch-first input
    h0_ref,     # (2, B, H)  f32  initial hidden (num_layers = 2)
    wih0_ref,   # (I, 3H)    bf16 layer-0 input weights, gate-fused (r|z|n)
    whh0_ref,   # (H, 3H)    bf16 layer-0 hidden weights, gate-fused
    wih1_ref,   # (H, 3H)    bf16 layer-1 input weights, gate-fused
    whh1_ref,   # (H, 3H)    bf16 layer-1 hidden weights, gate-fused
    bi0_ref,    # (1, 3H)    f32  layer-0 folded bias [b_ir+b_hr | b_iz+b_hz | b_in]
    bhn0_ref,   # (1, H)     f32  layer-0 b_hn
    bi1_ref,    # (1, 3H)    f32  layer-1 folded bias
    bhn1_ref,   # (1, H)     f32  layer-1 b_hn
    wout_ref,   # (H, O)     bf16 output Linear weight (pre-transposed)
    bout_ref,   # (1, O)     f32  output Linear bias
    out_ref,    # (B*S, O)   f32  per-step Linear outputs, batch-major (row b*S+t)
    hout_ref,   # (2, B, H)  f32  final hidden states
):
    B, S, I = x_ref.shape
    H = whh0_ref.shape[0]
    f32 = jnp.float32
    mmt = whh0_ref.dtype  # bf16 matmul input dtype; accumulation stays f32

    # ---- hoist loop-invariant weight / bias reads (each ref read once) ----
    whh0 = whh0_ref[...]
    wih1 = wih1_ref[...]
    whh1 = whh1_ref[...]
    bhn0 = bhn0_ref[...]
    bi1 = bi1_ref[...]
    bhn1 = bhn1_ref[...]

    def gru_step(gi_t, gh, bhn, h_prev):
        # gi_t, gh: (B, 3H) pre-activations; gate order (r, z, n).
        r = jax.nn.sigmoid(gi_t[:, 0:H] + gh[:, 0:H])
        z = jax.nn.sigmoid(gi_t[:, H:2 * H] + gh[:, H:2 * H])
        n = jnp.tanh(gi_t[:, 2 * H:3 * H] + r * (gh[:, 2 * H:3 * H] + bhn))
        return (1.0 - z) * n + z * h_prev

    # ---- layer-0 input projections: one fused batched matmul, off the loop ----
    x_flat = x_ref[...].astype(mmt).reshape(B * S, I)
    gi0 = (jnp.dot(x_flat, wih0_ref[...], preferred_element_type=f32)
           + bi0_ref[...]).reshape(B, S, 3 * H)

    # ---- layer-0 recurrence: ONE (B,H)x(H,3H) matmul per step ----
    h0 = h0_ref[0]
    h0_hist = []
    for t in range(S):  # S is small & static -> full unroll is fine
        gh0 = jnp.dot(h0.astype(mmt), whh0, preferred_element_type=f32)
        h0 = gru_step(gi0[:, t, :], gh0, bhn0, h0)
        h0_hist.append(h0)

    # ---- layer-1 input projections, hoisted off the recurrence ----
    h0_all_tm = jnp.concatenate(h0_hist, axis=0)          # (S*B, H), time-major
    gi1 = (jnp.dot(h0_all_tm.astype(mmt), wih1, preferred_element_type=f32)
           + bi1)                                          # (S*B, 3H)

    # ---- layer-1 recurrence: ONE (B,H)x(H,3H) matmul per step ----
    h1 = h0_ref[1]
    h1_hist = []
    for t in range(S):
        gh1 = jnp.dot(h1.astype(mmt), whh1, preferred_element_type=f32)
        h1 = gru_step(gi1[t * B:(t + 1) * B, :], gh1, bhn1, h1)
        h1_hist.append(h1)

    # ---- batched output Linear: one matmul + one bulk store ----
    # stack -> (B, S, H) -> (B*S, H) batch-major so out row index = b*S + t,
    # matching PyTorch's (B, S, O).view(-1).
    h1_all = jnp.stack(h1_hist, axis=1).reshape(B * S, H)
    y = (jnp.dot(h1_all.astype(mmt), wout_ref[...], preferred_element_type=f32)
         + bout_ref[...])
    out_ref[...] = y

    hout_ref[0] = h0
    hout_ref[1] = h1


# ----------------------------- wrapper ---------------------------------------


def decoder_rnn_forward(x, hidden, params, *, mm_dtype=jnp.bfloat16):
    """x: (B, S, I) f32, hidden: (2, B, H) f32. Returns (flat_out, hidden_out)."""
    B, S, I = x.shape
    L, _, H = hidden.shape
    assert L == 2, "kernel is specialized for num_layers=2 (the module default)"
    O = params["w_out"].shape[0]

    # PyTorch GRU weights are (3H, in), gate-major (r, z, n).  Transpose once
    # to (in, 3H) gate-fused blocks and cast to the MXU input dtype.
    wih0 = params["w_ih_l0"].T.astype(mm_dtype)   # (I, 3H)
    whh0 = params["w_hh_l0"].T.astype(mm_dtype)   # (H, 3H)
    wih1 = params["w_ih_l1"].T.astype(mm_dtype)   # (H, 3H)
    whh1 = params["w_hh_l1"].T.astype(mm_dtype)   # (H, 3H)

    def fold_bias(b_ih, b_hh):
        # folded (1, 3H): [b_ir+b_hr | b_iz+b_hz | b_in]; b_hn kept separate
        # because it must stay inside r*(gh_n + b_hn).
        bi = jnp.concatenate([b_ih[0:2 * H] + b_hh[0:2 * H], b_ih[2 * H:3 * H]])
        return bi.reshape(1, 3 * H), b_hh[2 * H:3 * H].reshape(1, H)

    bi0, bhn0 = fold_bias(params["b_ih_l0"], params["b_hh_l0"])
    bi1, bhn1 = fold_bias(params["b_ih_l1"], params["b_hh_l1"])
    wout = params["w_out"].T.astype(mm_dtype)     # (H, O)
    bout = params["b_out"].reshape(1, -1)         # (1, O)

    inputs = (x, hidden, wih0, whh0, wih1, whh1, bi0, bhn0, bi1, bhn1, wout, bout)
    vmem = pl.BlockSpec(memory_space=pltpu.MemorySpace.VMEM)

    bytes_accessed = int(sum(a.size * a.dtype.itemsize for a in inputs)
                         + B * S * O * 4 + L * B * H * 4)
    cost = pl.CostEstimate(
        flops=2 * B * S * (3 * I * H + 9 * H * H + H * O),
        transcendentals=6 * B * S * H,
        bytes_accessed=bytes_accessed,
    )

    out_2d, h_out = pl.pallas_call(
        decoder_rnn_kernel,
        out_shape=(
            jax.ShapeDtypeStruct((B * S, O), jnp.float32),
            jax.ShapeDtypeStruct((L, B, H), jnp.float32),
        ),
        in_specs=[vmem] * len(inputs),
        out_specs=(vmem, vmem),
        cost_estimate=cost,
    )(*inputs)

    # PyTorch: output is (B, S, O) (batch_first) then .view(-1) -- reshape is free.
    return out_2d.reshape(-1), h_out


# ----------------------------- reference (pure JAX, f32) ----------------------


def _gru_cell_ref(x, h, w_ih, w_hh, b_ih, b_hh, H):
    gi = x @ w_ih.T + b_ih
    gh = h @ w_hh.T + b_hh
    r = jax.nn.sigmoid(gi[:, 0:H] + gh[:, 0:H])
    z = jax.nn.sigmoid(gi[:, H:2 * H] + gh[:, H:2 * H])
    n = jnp.tanh(gi[:, 2 * H:3 * H] + r * gh[:, 2 * H:3 * H])
    return (1.0 - z) * n + z * h


def decoder_rnn_reference(x, hidden, params):
    B, S, I = x.shape
    H = hidden.shape[-1]
    h0, h1 = hidden[0], hidden[1]
    outs = []
    for t in range(S):
        x_t = x[:, t, :]
        h0 = _gru_cell_ref(x_t, h0, params["w_ih_l0"], params["w_hh_l0"],
                           params["b_ih_l0"], params["b_hh_l0"], H)
        h1 = _gru_cell_ref(h0, h1, params["w_ih_l1"], params["w_hh_l1"],
                           params["b_ih_l1"], params["b_hh_l1"], H)
        outs.append(h1 @ params["w_out"].T + params["b_out"])
    out = jnp.stack(outs, axis=1)  # (B, S, O)
    return out.reshape(-1), jnp.stack([h0, h1], axis=0)


# ----------------------------- main -------------------------------------------


def init_params(key, input_size, hidden_size, output_size):
    """Deterministic synthetic params (same shapes as nn.GRU + nn.Linear)."""
    ks = jax.random.split(key, 10)
    k = 1.0 / jnp.sqrt(hidden_size)
    u = lambda kk, shape: jax.random.uniform(kk, shape, jnp.float32, -k, k)
    return {
        "w_ih_l0": u(ks[0], (3 * hidden_size, input_size)),
        "w_hh_l0": u(ks[1], (3 * hidden_size, hidden_size)),
        "b_ih_l0": u(ks[2], (3 * hidden_size,)),
        "b_hh_l0": u(ks[3], (3 * hidden_size,)),
        "w_ih_l1": u(ks[4], (3 * hidden_size, hidden_size)),
        "w_hh_l1": u(ks[5], (3 * hidden_size, hidden_size)),
        "b_ih_l1": u(ks[6], (3 * hidden_size,)),
        "b_hh_l1": u(ks[7], (3 * hidden_size,)),
        "w_out": u(ks[8], (output_size, hidden_size)),
        "b_out": u(ks[9], (output_size,)),
    }


if __name__ == "__main__":
    B, S = 2, 8
    input_size, hidden_size, output_size = 16, 32, 10

    key = jax.random.PRNGKey(0)
    kx, kh, kp = jax.random.split(key, 3)
    x = jax.random.normal(kx, (B, S, input_size), jnp.float32)
    hidden = jax.random.normal(kh, (2, B, hidden_size), jnp.float32)  # initHidden would be zeros
    params = init_params(kp, input_size, hidden_size, output_size)

    forward = jax.jit(decoder_rnn_forward)
    flat_out, h_out = forward(x, hidden, params)
    flat_out = jax.block_until_ready(flat_out)
    h_out = jax.block_until_ready(h_out)

    ref_out, ref_h = decoder_rnn_reference(x, hidden, params)
    assert flat_out.shape == (B * S * output_size,)
    assert h_out.shape == (2, B, hidden_size)
    # Tolerance covers bf16 MXU-input quantization (f32 accumulation); typical
    # max error at these shapes is ~5e-3, while a gate/bias bug would be O(0.1).
    assert jnp.allclose(flat_out, ref_out, atol=3e-2, rtol=3e-2)
    assert jnp.allclose(h_out, ref_h, atol=3e-2, rtol=3e-2)

    print("KERNEL_OK")
</pallas_src>

<mosaic_0001>
module attributes {stable_mosaic.version = 11 : i64} {
  func.func @decoder_rnn_kernel(%arg0: memref<2x8x16xf32, #tpu.memory_space<vmem>>, %arg1: memref<2x2x32xf32, #tpu.memory_space<vmem>>, %arg2: memref<16x96xbf16, #tpu.memory_space<vmem>>, %arg3: memref<32x96xbf16, #tpu.memory_space<vmem>>, %arg4: memref<32x96xbf16, #tpu.memory_space<vmem>>, %arg5: memref<32x96xbf16, #tpu.memory_space<vmem>>, %arg6: memref<1x96xf32, #tpu.memory_space<vmem>>, %arg7: memref<1x32xf32, #tpu.memory_space<vmem>>, %arg8: memref<1x96xf32, #tpu.memory_space<vmem>>, %arg9: memref<1x32xf32, #tpu.memory_space<vmem>>, %arg10: memref<32x10xbf16, #tpu.memory_space<vmem>>, %arg11: memref<1x10xf32, #tpu.memory_space<vmem>>, %arg12: memref<16x10xf32, #tpu.memory_space<vmem>>, %arg13: memref<2x2x32xf32, #tpu.memory_space<vmem>>) attributes {dimension_semantics = [], scalar_prefetch = 0 : i64, scratch_operands = 0 : i64, tpu.core_type = #tpu.core_type<tc>} {
    %c0 = arith.constant 0 : index
    %c0_0 = arith.constant 0 : index
    %0 = vector.load %arg3[%c0, %c0_0] : memref<32x96xbf16, #tpu.memory_space<vmem>>, vector<32x96xbf16>
    %c0_1 = arith.constant 0 : index
    %c0_2 = arith.constant 0 : index
    %1 = vector.load %arg4[%c0_1, %c0_2] : memref<32x96xbf16, #tpu.memory_space<vmem>>, vector<32x96xbf16>
    %c0_3 = arith.constant 0 : index
    %c0_4 = arith.constant 0 : index
    %2 = vector.load %arg5[%c0_3, %c0_4] : memref<32x96xbf16, #tpu.memory_space<vmem>>, vector<32x96xbf16>
    %c0_5 = arith.constant 0 : index
    %c0_6 = arith.constant 0 : index
    %3 = vector.load %arg7[%c0_5, %c0_6] : memref<1x32xf32, #tpu.memory_space<vmem>>, vector<1x32xf32>
    %c0_7 = arith.constant 0 : index
    %c0_8 = arith.constant 0 : index
    %4 = vector.load %arg8[%c0_7, %c0_8] : memref<1x96xf32, #tpu.memory_space<vmem>>, vector<1x96xf32>
    %c0_9 = arith.constant 0 : index
    %c0_10 = arith.constant 0 : index
    %5 = vector.load %arg9[%c0_9, %c0_10] : memref<1x32xf32, #tpu.memory_space<vmem>>, vector<1x32xf32>
    %c0_11 = arith.constant 0 : index
    %c0_12 = arith.constant 0 : index
    %c0_13 = arith.constant 0 : index
    %6 = vector.load %arg0[%c0_11, %c0_12, %c0_13] : memref<2x8x16xf32, #tpu.memory_space<vmem>>, vector<2x8x16xf32>
    %7 = arith.truncf %6 : vector<2x8x16xf32> to vector<2x8x16xbf16>
    %8 = vector.shape_cast %7 : vector<2x8x16xbf16> to vector<16x16xbf16>
    %c0_14 = arith.constant 0 : index
    %c0_15 = arith.constant 0 : index
    %9 = vector.load %arg2[%c0_14, %c0_15] : memref<16x96xbf16, #tpu.memory_space<vmem>>, vector<16x96xbf16>
    %cst = arith.constant dense<0.000000e+00> : vector<16x96xf32>
    %10 = tpu.matmul %8, %9, %cst {dimension_numbers = #tpu.dot_dimension_numbers<[1], [0], [0], [1], [0, 0, 1, 1], [], []>} : vector<16x16xbf16>, vector<16x96xbf16>, vector<16x96xf32> -> vector<16x96xf32>
    %c0_16 = arith.constant 0 : index
    %c0_17 = arith.constant 0 : index
    %11 = vector.load %arg6[%c0_16, %c0_17] : memref<1x96xf32, #tpu.memory_space<vmem>>, vector<1x96xf32>
    %12 = vector.broadcast %11 : vector<1x96xf32> to vector<16x96xf32>
    %13 = arith.addf %10, %12 : vector<16x96xf32>
    %14 = vector.shape_cast %13 : vector<16x96xf32> to vector<2x8x96xf32>
    %c0_18 = arith.constant 0 : index
    %c0_19 = arith.constant 0 : index
    %c0_20 = arith.constant 0 : index
    %15 = vector.load %arg1[%c0_18, %c0_19, %c0_20] : memref<2x2x32xf32, #tpu.memory_space<vmem>>, vector<1x2x32xf32>
    %16 = vector.shape_cast %15 : vector<1x2x32xf32> to vector<2x32xf32>
    %17 = arith.truncf %16 : vector<2x32xf32> to vector<2x32xbf16>
    %cst_21 = arith.constant dense<0.000000e+00> : vector<2x96xf32>
    %18 = tpu.matmul %17, %0, %cst_21 {dimension_numbers = #tpu.dot_dimension_numbers<[1], [0], [0], [1], [0, 0, 1, 1], [], []>} : vector<2x32xbf16>, vector<32x96xbf16>, vector<2x96xf32> -> vector<2x96xf32>
    %19 = vector.extract_strided_slice %14 {offsets = [0, 0, 0], sizes = [2, 1, 96], strides = [1, 1, 1]} : vector<2x8x96xf32> to vector<2x1x96xf32>
    %20 = vector.shape_cast %19 : vector<2x1x96xf32> to vector<2x96xf32>
    %21 = vector.extract_strided_slice %20 {offsets = [0, 0], sizes = [2, 32], strides = [1, 1]} : vector<2x96xf32> to vector<2x32xf32>
    %22 = vector.extract_strided_slice %18 {offsets = [0, 0], sizes = [2, 32], strides = [1, 1]} : vector<2x96xf32> to vector<2x32xf32>
    %23 = arith.addf %21, %22 : vector<2x32xf32>
    %24 = arith.negf %23 : vector<2x32xf32>
    %25 = math.exp %24 : vector<2x32xf32>
    %cst_22 = arith.constant 1.000000e+00 : f32
    %26 = vector.broadcast %cst_22 : f32 to vector<2x32xf32>
    %27 = arith.addf %26, %25 : vector<2x32xf32>
    %28 = arith.divf %26, %27 : vector<2x32xf32>
    %29 = vector.extract_strided_slice %20 {offsets = [0, 32], sizes = [2, 32], strides = [1, 1]} : vector<2x96xf32> to vector<2x32xf32>
    %30 = vector.extract_strided_slice %18 {offsets = [0, 32], sizes = [2, 32], strides = [1, 1]} : vector<2x96xf32> to vector<2x32xf32>
    %31 = arith.addf %29, %30 : vector<2x32xf32>
    %32 = arith.negf %31 : vector<2x32xf32>
    %33 = math.exp %32 : vector<2x32xf32>
    %cst_23 = arith.constant 1.000000e+00 : f32
    %34 = vector.broadcast %cst_23 : f32 to vector<2x32xf32>
    %35 = arith.addf %34, %33 : vector<2x32xf32>
    %36 = arith.divf %34, %35 : vector<2x32xf32>
    %37 = vector.extract_strided_slice %20 {offsets = [0, 64], sizes = [2, 32], strides = [1, 1]} : vector<2x96xf32> to vector<2x32xf32>
    %38 = vector.extract_strided_slice %18 {offsets = [0, 64], sizes = [2, 32], strides = [1, 1]} : vector<2x96xf32> to vector<2x32xf32>
    %39 = vector.broadcast %3 : vector<1x32xf32> to vector<2x32xf32>
    %40 = arith.addf %38, %39 : vector<2x32xf32>
    %41 = arith.mulf %28, %40 : vector<2x32xf32>
    %42 = arith.addf %37, %41 : vector<2x32xf32>
    %43 = math.tanh %42 : vector<2x32xf32>
    %cst_24 = arith.constant 1.000000e+00 : f32
    %44 = vector.broadcast %cst_24 : f32 to vector<2x32xf32>
    %45 = arith.subf %44, %36 : vector<2x32xf32>
    %46 = arith.mulf %45, %43 : vector<2x32xf32>
    %47 = arith.mulf %36, %16 : vector<2x32xf32>
    %48 = arith.addf %46, %47 : vector<2x32xf32>
    %49 = arith.truncf %48 : vector<2x32xf32> to vector<2x32xbf16>
    %cst_25 = arith.constant dense<0.000000e+00> : vector<2x96xf32>
    %50 = tpu.matmul %49, %0, %cst_25 {dimension_numbers = #tpu.dot_dimension_numbers<[1], [0], [0], [1], [0, 0, 1, 1], [], []>} : vector<2x32xbf16>, vector<32x96xbf16>, vector<2x96xf32> -> vector<2x96xf32>
    %51 = vector.extract_strided_slice %14 {offsets = [0, 1, 0], sizes = [2, 1, 96], strides = [1, 1, 1]} : vector<2x8x96xf32> to vector<2x1x96xf32>
    %52 = vector.shape_cast %51 : vector<2x1x96xf32> to vector<2x96xf32>
    %53 = vector.extract_strided_slice %52 {offsets = [0, 0], sizes = [2, 32], strides = [1, 1]} : vector<2x96xf32> to vector<2x32xf32>
    %54 = vector.extract_strided_slice %50 {offsets = [0, 0], sizes = [2, 32], strides = [1, 1]} : vector<2x96xf32> to vector<2x32xf32>
    %55 = arith.addf %53, %54 : vector<2x32xf32>
    %56 = arith.negf %55 : vector<2x32xf32>
    %57 = math.exp %56 : vector<2x32xf32>
    %cst_26 = arith.constant 1.000000e+00 : f32
    %58 = vector.broadcast %cst_26 : f32 to vector<2x32xf32>
    %59 = arith.addf %58, %57 : vector<2x32xf32>
    %60 = arith.divf %58, %59 : vector<2x32xf32>
    %61 = vector.extract_strided_slice %52 {offsets = [0, 32], sizes = [2, 32], strides = [1, 1]} : vector<2x96xf32> to vector<2x32xf32>
    %62 = vector.extract_strided_slice %50 {offsets = [0, 32], sizes = [2, 32], strides = [1, 1]} : vector<2x96xf32> to vector<2x32xf32>
    %63 = arith.addf %61, %62 : vector<2x32xf32>
    %64 = arith.negf %63 : vector<2x32xf32>
    %65 = math.exp %64 : vector<2x32xf32>
    %cst_27 = arith.constant 1.000000e+00 : f32
    %66 = vector.broadcast %cst_27 : f32 to vector<2x32xf32>
    %67 = arith.addf %66, %65 : vector<2x32xf32>
    %68 = arith.divf %66, %67 : vector<2x32xf32>
    %69 = vector.extract_strided_slice %52 {offsets = [0, 64], sizes = [2, 32], strides = [1, 1]} : vector<2x96xf32> to vector<2x32xf32>
    %70 = vector.extract_strided_slice %50 {offsets = [0, 64], sizes = [2, 32], strides = [1, 1]} : vector<2x96xf32> to vector<2x32xf32>
    %71 = vector.broadcast %3 : vector<1x32xf32> to vector<2x32xf32>
    %72 = arith.addf %70, %71 : vector<2x32xf32>
    %73 = arith.mulf %60, %72 : vector<2x32xf32>
    %74 = arith.addf %69, %73 : vector<2x32xf32>
    %75 = math.tanh %74 : vector<2x32xf32>
    %cst_28 = arith.constant 1.000000e+00 : f32
    %76 = vector.broadcast %cst_28 : f32 to vector<2x32xf32>
    %77 = arith.subf %76, %68 : vector<2x32xf32>
    %78 = arith.mulf %77, %75 : vector<2x32xf32>
    %79 = arith.mulf %68, %48 : vector<2x32xf32>
    %80 = arith.addf %78, %79 : vector<2x32xf32>
    %81 = arith.truncf %80 : vector<2x32xf32> to vector<2x32xbf16>
    %cst_29 = arith.constant dense<0.000000e+00> : vector<2x96xf32>
    %82 = tpu.matmul %81, %0, %cst_29 {dimension_numbers = #tpu.dot_dimension_numbers<[1], [0], [0], [1], [0, 0, 1, 1], [], []>} : vector<2x32xbf16>, vector<32x96xbf16>, vector<2x96xf32> -> vector<2x96xf32>
    %83 = vector.extract_strided_slice %14 {offsets = [0, 2, 0], sizes = [2, 1, 96], strides = [1, 1, 1]} : vector<2x8x96xf32> to vector<2x1x96xf32>
    %84 = vector.shape_cast %83 : vector<2x1x96xf32> to vector<2x96xf32>
    %85 = vector.extract_strided_slice %84 {offsets = [0, 0], sizes = [2, 32], strides = [1, 1]} : vector<2x96xf32> to vector<2x32xf32>
    %86 = vector.extract_strided_slice %82 {offsets = [0, 0], sizes = [2, 32], strides = [1, 1]} : vector<2x96xf32> to vector<2x32xf32>
    %87 = arith.addf %85, %86 : vector<2x32xf32>
    %88 = arith.negf %87 : vector<2x32xf32>
    %89 = math.exp %88 : vector<2x32xf32>
    %cst_30 = arith.constant 1.000000e+00 : f32
    %90 = vector.broadcast %cst_30 : f32 to vector<2x32xf32>
    %91 = arith.addf %90, %89 : vector<2x32xf32>
    %92 = arith.divf %90, %91 : vector<2x32xf32>
    %93 = vector.extract_strided_slice %84 {offsets = [0, 32], sizes = [2, 32], strides = [1, 1]} : vector<2x96xf32> to vector<2x32xf32>
    %94 = vector.extract_strided_slice %82 {offsets = [0, 32], sizes = [2, 32], strides = [1, 1]} : vector<2x96xf32> to vector<2x32xf32>
    %95 = arith.addf %93, %94 : vector<2x32xf32>
    %96 = arith.negf %95 : vector<2x32xf32>
    %97 = math.exp %96 : vector<2x32xf32>
    %cst_31 = arith.constant 1.000000e+00 : f32
    %98 = vector.broadcast %cst_31 : f32 to vector<2x32xf32>
    %99 = arith.addf %98, %97 : vector<2x32xf32>
    %100 = arith.divf %98, %99 : vector<2x32xf32>
    %101 = vector.extract_strided_slice %84 {offsets = [0, 64], sizes = [2, 32], strides = [1, 1]} : vector<2x96xf32> to vector<2x32xf32>
    %102 = vector.extract_strided_slice %82 {offsets = [0, 64], sizes = [2, 32], strides = [1, 1]} : vector<2x96xf32> to vector<2x32xf32>
    %103 = vector.broadcast %3 : vector<1x32xf32> to vector<2x32xf32>
    %104 = arith.addf %102, %103 : vector<2x32xf32>
    %105 = arith.mulf %92, %104 : vector<2x32xf32>
    %106 = arith.addf %101, %105 : vector<2x32xf32>
    %107 = math.tanh %106 : vector<2x32xf32>
    %cst_32 = arith.constant 1.000000e+00 : f32
    %108 = vector.broadcast %cst_32 : f32 to vector<2x32xf32>
    %109 = arith.subf %108, %100 : vector<2x32xf32>
    %110 = arith.mulf %109, %107 : vector<2x32xf32>
    %111 = arith.mulf %100, %80 : vector<2x32xf32>
    %112 = arith.addf %110, %111 : vector<2x32xf32>
    %113 = arith.truncf %112 : vector<2x32xf32> to vector<2x32xbf16>
    %cst_33 = arith.constant dense<0.000000e+00> : vector<2x96xf32>
    %114 = tpu.matmul %113, %0, %cst_33 {dimension_numbers = #tpu.dot_dimension_numbers<[1], [0], [0], [1], [0, 0, 1, 1], [], []>} : vector<2x32xbf16>, vector<32x96xbf16>, vector<2x96xf32> -> vector<2x96xf32>
    %115 = vector.extract_strided_slice %14 {offsets = [0, 3, 0], sizes = [2, 1, 96], strides = [1, 1, 1]} : vector<2x8x96xf32> to vector<2x1x96xf32>
    %116 = vector.shape_cast %115 : vector<2x1x96xf32> to vector<2x96xf32>
    %117 = vector.extract_strided_slice %116 {offsets = [0, 0], sizes = [2, 32], strides = [1, 1]} : vector<2x96xf32> to vector<2x32xf32>
    %118 = vector.extract_strided_slice %114 {offsets = [0, 0], sizes = [2, 32], strides = [1, 1]} : vector<2x96xf32> to vector<2x32xf32>
    %119 = arith.addf %117, %118 : vector<2x32xf32>
    %120 = arith.negf %119 : vector<2x32xf32>
    %121 = math.exp %120 : vector<2x32xf32>
    %cst_34 = arith.constant 1.000000e+00 : f32
    %122 = vector.broadcast %cst_34 : f32 to vector<2x32xf32>
    %123 = arith.addf %122, %121 : vector<2x32xf32>
    %124 = arith.divf %122, %123 : vector<2x32xf32>
    %125 = vector.extract_strided_slice %116 {offsets = [0, 32], sizes = [2, 32], strides = [1, 1]} : vector<2x96xf32> to vector<2x32xf32>
    %126 = vector.extract_strided_slice %114 {offsets = [0, 32], sizes = [2, 32], strides = [1, 1]} : vector<2x96xf32> to vector<2x32xf32>
    %127 = arith.addf %125, %126 : vector<2x32xf32>
    %128 = arith.negf %127 : vector<2x32xf32>
    %129 = math.exp %128 : vector<2x32xf32>
    %cst_35 = arith.constant 1.000000e+00 : f32
    %130 = vector.broadcast %cst_35 : f32 to vector<2x32xf32>
    %131 = arith.addf %130, %129 : vector<2x32xf32>
    %132 = arith.divf %130, %131 : vector<2x32xf32>
    %133 = vector.extract_strided_slice %116 {offsets = [0, 64], sizes = [2, 32], strides = [1, 1]} : vector<2x96xf32> to vector<2x32xf32>
    %134 = vector.extract_strided_slice %114 {offsets = [0, 64], sizes = [2, 32], strides = [1, 1]} : vector<2x96xf32> to vector<2x32xf32>
    %135 = vector.broadcast %3 : vector<1x32xf32> to vector<2x32xf32>
    %136 = arith.addf %134, %135 : vector<2x32xf32>
    %137 = arith.mulf %124, %136 : vector<2x32xf32>
    %138 = arith.addf %133, %137 : vector<2x32xf32>
    %139 = math.tanh %138 : vector<2x32xf32>
    %cst_36 = arith.constant 1.000000e+00 : f32
    %140 = vector.broadcast %cst_36 : f32 to vector<2x32xf32>
    %141 = arith.subf %140, %132 : vector<2x32xf32>
    %142 = arith.mulf %141, %139 : vector<2x32xf32>
    %143 = arith.mulf %132, %112 : vector<2x32xf32>
    %144 = arith.addf %142, %143 : vector<2x32xf32>
    %145 = arith.truncf %144 : vector<2x32xf32> to vector<2x32xbf16>
    %cst_37 = arith.constant dense<0.000000e+00> : vector<2x96xf32>
    %146 = tpu.matmul %145, %0, %cst_37 {dimension_numbers = #tpu.dot_dimension_numbers<[1], [0], [0], [1], [0, 0, 1, 1], [], []>} : vector<2x32xbf16>, vector<32x96xbf16>, vector<2x96xf32> -> vector<2x96xf32>
    %147 = vector.extract_strided_slice %14 {offsets = [0, 4, 0], sizes = [2, 1, 96], strides = [1, 1, 1]} : vector<2x8x96xf32> to vector<2x1x96xf32>
    %148 = vector.shape_cast %147 : vector<2x1x96xf32> to vector<2x96xf32>
    %149 = vector.extract_strided_slice %148 {offsets = [0, 0], sizes = [2, 32], strides = [1, 1]} : vector<2x96xf32> to vector<2x32xf32>
    %150 = vector.extract_strided_slice %146 {offsets = [0, 0], sizes = [2, 32], strides = [1, 1]} : vector<2x96xf32> to vector<2x32xf32>
    %151 = arith.addf %149, %150 : vector<2x32xf32>
    %152 = arith.negf %151 : vector<2x32xf32>
    %153 = math.exp %152 : vector<2x32xf32>
    %cst_38 = arith.constant 1.000000e+00 : f32
    %154 = vector.broadcast %cst_38 : f32 to vector<2x32xf32>
    %155 = arith.addf %154, %153 : vector<2x32xf32>
    %156 = arith.divf %154, %155 : vector<2x32xf32>
    %157 = vector.extract_strided_slice %148 {offsets = [0, 32], sizes = [2, 32], strides = [1, 1]} : vector<2x96xf32> to vector<2x32xf32>
    %158 = vector.extract_strided_slice %146 {offsets = [0, 32], sizes = [2, 32], strides = [1, 1]} : vector<2x96xf32> to vector<2x32xf32>
    %159 = arith.addf %157, %158 : vector<2x32xf32>
    %160 = arith.negf %159 : vector<2x32xf32>
    %161 = math.exp %160 : vector<2x32xf32>
    %cst_39 = arith.constant 1.000000e+00 : f32
    %162 = vector.broadcast %cst_39 : f32 to vector<2x32xf32>
    %163 = arith.addf %162, %161 : vector<2x32xf32>
    %164 = arith.divf %162, %163 : vector<2x32xf32>
    %165 = vector.extract_strided_slice %148 {offsets = [0, 64], sizes = [2, 32], strides = [1, 1]} : vector<2x96xf32> to vector<2x32xf32>
    %166 = vector.extract_strided_slice %146 {offsets = [0, 64], sizes = [2, 32], strides = [1, 1]} : vector<2x96xf32> to vector<2x32xf32>
    %167 = vector.broadcast %3 : vector<1x32xf32> to vector<2x32xf32>
    %168 = arith.addf %166, %167 : vector<2x32xf32>
    %169 = arith.mulf %156, %168 : vector<2x32xf32>
    %170 = arith.addf %165, %169 : vector<2x32xf32>
    %171 = math.tanh %170 : vector<2x32xf32>
    %cst_40 = arith.constant 1.000000e+00 : f32
    %172 = vector.broadcast %cst_40 : f32 to vector<2x32xf32>
    %173 = arith.subf %172, %164 : vector<2x32xf32>
    %174 = arith.mulf %173, %171 : vector<2x32xf32>
    %175 = arith.mulf %164, %144 : vector<2x32xf32>
    %176 = arith.addf %174, %175 : vector<2x32xf32>
    %177 = arith.truncf %176 : vector<2x32xf32> to vector<2x32xbf16>
    %cst_41 = arith.constant dense<0.000000e+00> : vector<2x96xf32>
    %178 = tpu.matmul %177, %0, %cst_41 {dimension_numbers = #tpu.dot_dimension_numbers<[1], [0], [0], [1], [0, 0, 1, 1], [], []>} : vector<2x32xbf16>, vector<32x96xbf16>, vector<2x96xf32> -> vector<2x96xf32>
    %179 = vector.extract_strided_slice %14 {offsets = [0, 5, 0], sizes = [2, 1, 96], strides = [1, 1, 1]} : vector<2x8x96xf32> to vector<2x1x96xf32>
    %180 = vector.shape_cast %179 : vector<2x1x96xf32> to vector<2x96xf32>
    %181 = vector.extract_strided_slice %180 {offsets = [0, 0], sizes = [2, 32], strides = [1, 1]} : vector<2x96xf32> to vector<2x32xf32>
    %182 = vector.extract_strided_slice %178 {offsets = [0, 0], sizes = [2, 32], strides = [1, 1]} : vector<2x96xf32> to vector<2x32xf32>
    %183 = arith.addf %181, %182 : vector<2x32xf32>
    %184 = arith.negf %183 : vector<2x32xf32>
    %185 = math.exp %184 : vector<2x32xf32>
    %cst_42 = arith.constant 1.000000e+00 : f32
    %186 = vector.broadcast %cst_42 : f32 to vector<2x32xf32>
    %187 = arith.addf %186, %185 : vector<2x32xf32>
    %188 = arith.divf %186, %187 : vector<2x32xf32>
    %189 = vector.extract_strided_slice %180 {offsets = [0, 32], sizes = [2, 32], strides = [1, 1]} : vector<2x96xf32> to vector<2x32xf32>
    %190 = vector.extract_strided_slice %178 {offsets = [0, 32], sizes = [2, 32], strides = [1, 1]} : vector<2x96xf32> to vector<2x32xf32>
    %191 = arith.addf %189, %190 : vector<2x32xf32>
    %192 = arith.negf %191 : vector<2x32xf32>
    %193 = math.exp %192 : vector<2x32xf32>
    %cst_43 = arith.constant 1.000000e+00 : f32
    %194 = vector.broadcast %cst_43 : f32 to vector<2x32xf32>
    %195 = arith.addf %194, %193 : vector<2x32xf32>
    %196 = arith.divf %194, %195 : vector<2x32xf32>
    %197 = vector.extract_strided_slice %180 {offsets = [0, 64], sizes = [2, 32], strides = [1, 1]} : vector<2x96xf32> to vector<2x32xf32>
    %198 = vector.extract_strided_slice %178 {offsets = [0, 64], sizes = [2, 32], strides = [1, 1]} : vector<2x96xf32> to vector<2x32xf32>
    %199 = vector.broadcast %3 : vector<1x32xf32> to vector<2x32xf32>
    %200 = arith.addf %198, %199 : vector<2x32xf32>
    %201 = arith.mulf %188, %200 : vector<2x32xf32>
    %202 = arith.addf %197, %201 : vector<2x32xf32>
    %203 = math.tanh %202 : vector<2x32xf32>
    %cst_44 = arith.constant 1.000000e+00 : f32
    %204 = vector.broadcast %cst_44 : f32 to vector<2x32xf32>
    %205 = arith.subf %204, %196 : vector<2x32xf32>
    %206 = arith.mulf %205, %203 : vector<2x32xf32>
    %207 = arith.mulf %196, %176 : vector<2x32xf32>
    %208 = arith.addf %206, %207 : vector<2x32xf32>
    %209 = arith.truncf %208 : vector<2x32xf32> to vector<2x32xbf16>
    %cst_45 = arith.constant dense<0.000000e+00> : vector<2x96xf32>
    %210 = tpu.matmul %209, %0, %cst_45 {dimension_numbers = #tpu.dot_dimension_numbers<[1], [0], [0], [1], [0, 0, 1, 1], [], []>} : vector<2x32xbf16>, vector<32x96xbf16>, vector<2x96xf32> -> vector<2x96xf32>
    %211 = vector.extract_strided_slice %14 {offsets = [0, 6, 0], sizes = [2, 1, 96], strides = [1, 1, 1]} : vector<2x8x96xf32> to vector<2x1x96xf32>
    %212 = vector.shape_cast %211 : vector<2x1x96xf32> to vector<2x96xf32>
    %213 = vector.extract_strided_slice %212 {offsets = [0, 0], sizes = [2, 32], strides = [1, 1]} : vector<2x96xf32> to vector<2x32xf32>
    %214 = vector.extract_strided_slice %210 {offsets = [0, 0], sizes = [2, 32], strides = [1, 1]} : vector<2x96xf32> to vector<2x32xf32>
    %215 = arith.addf %213, %214 : vector<2x32xf32>
    %216 = arith.negf %215 : vector<2x32xf32>
    %217 = math.exp %216 : vector<2x32xf32>
    %cst_46 = arith.constant 1.000000e+00 : f32
    %218 = vector.broadcast %cst_46 : f32 to vector<2x32xf32>
    %219 = arith.addf %218, %217 : vector<2x32xf32>
    %220 = arith.divf %218, %219 : vector<2x32xf32>
    %221 = vector.extract_strided_slice %212 {offsets = [0, 32], sizes = [2, 32], strides = [1, 1]} : vector<2x96xf32> to vector<2x32xf32>
    %222 = vector.extract_strided_slice %210 {offsets = [0, 32], sizes = [2, 32], strides = [1, 1]} : vector<2x96xf32> to vector<2x32xf32>
    %223 = arith.addf %221, %222 : vector<2x32xf32>
    %224 = arith.negf %223 : vector<2x32xf32>
    %225 = math.exp %224 : vector<2x32xf32>
    %cst_47 = arith.constant 1.000000e+00 : f32
    %226 = vector.broadcast %cst_47 : f32 to vector<2x32xf32>
    %227 = arith.addf %226, %225 : vector<2x32xf32>
    %228 = arith.divf %226, %227 : vector<2x32xf32>
    %229 = vector.extract_strided_slice %212 {offsets = [0, 64], sizes = [2, 32], strides = [1, 1]} : vector<2x96xf32> to vector<2x32xf32>
    %230 = vector.extract_strided_slice %210 {offsets = [0, 64], sizes = [2, 32], strides = [1, 1]} : vector<2x96xf32> to vector<2x32xf32>
    %231 = vector.broadcast %3 : vector<1x32xf32> to vector<2x32xf32>
    %232 = arith.addf %230, %231 : vector<2x32xf32>
    %233 = arith.mulf %220, %232 : vector<2x32xf32>
    %234 = arith.addf %229, %233 : vector<2x32xf32>
    %235 = math.tanh %234 : vector<2x32xf32>
    %cst_48 = arith.constant 1.000000e+00 : f32
    %236 = vector.broadcast %cst_48 : f32 to vector<2x32xf32>
    %237 = arith.subf %236, %228 : vector<2x32xf32>
    %238 = arith.mulf %237, %235 : vector<2x32xf32>
    %239 = arith.mulf %228, %208 : vector<2x32xf32>
    %240 = arith.addf %238, %239 : vector<2x32xf32>
    %241 = arith.truncf %240 : vector<2x32xf32> to vector<2x32xbf16>
    %cst_49 = arith.constant dense<0.000000e+00> : vector<2x96xf32>
    %242 = tpu.matmul %241, %0, %cst_49 {dimension_numbers = #tpu.dot_dimension_numbers<[1], [0], [0], [1], [0, 0, 1, 1], [], []>} : vector<2x32xbf16>, vector<32x96xbf16>, vector<2x96xf32> -> vector<2x96xf32>
    %243 = vector.extract_strided_slice %14 {offsets = [0, 7, 0], sizes = [2, 1, 96], strides = [1, 1, 1]} : vector<2x8x96xf32> to vector<2x1x96xf32>
    %244 = vector.shape_cast %243 : vector<2x1x96xf32> to vector<2x96xf32>
    %245 = vector.extract_strided_slice %244 {offsets = [0, 0], sizes = [2, 32], strides = [1, 1]} : vector<2x96xf32> to vector<2x32xf32>
    %246 = vector.extract_strided_slice %242 {offsets = [0, 0], sizes = [2, 32], strides = [1, 1]} : vector<2x96xf32> to vector<2x32xf32>
    %247 = arith.addf %245, %246 : vector<2x32xf32>
    %248 = arith.negf %247 : vector<2x32xf32>
    %249 = math.exp %248 : vector<2x32xf32>
    %cst_50 = arith.constant 1.000000e+00 : f32
    %250 = vector.broadcast %cst_50 : f32 to vector<2x32xf32>
    %251 = arith.addf %250, %249 : vector<2x32xf32>
    %252 = arith.divf %250, %251 : vector<2x32xf32>
    %253 = vector.extract_strided_slice %244 {offsets = [0, 32], sizes = [2, 32], strides = [1, 1]} : vector<2x96xf32> to vector<2x32xf32>
    %254 = vector.extract_strided_slice %242 {offsets = [0, 32], sizes = [2, 32], strides = [1, 1]} : vector<2x96xf32> to vector<2x32xf32>
    %255 = arith.addf %253, %254 : vector<2x32xf32>
    %256 = arith.negf %255 : vector<2x32xf32>
    %257 = math.exp %256 : vector<2x32xf32>
    %cst_51 = arith.constant 1.000000e+00 : f32
    %258 = vector.broadcast %cst_51 : f32 to vector<2x32xf32>
    %259 = arith.addf %258, %257 : vector<2x32xf32>
    %260 = arith.divf %258, %259 : vector<2x32xf32>
    %261 = vector.extract_strided_slice %244 {offsets = [0, 64], sizes = [2, 32], strides = [1, 1]} : vector<2x96xf32> to vector<2x32xf32>
    %262 = vector.extract_strided_slice %242 {offsets = [0, 64], sizes = [2, 32], strides = [1, 1]} : vector<2x96xf32> to vector<2x32xf32>
    %263 = vector.broadcast %3 : vector<1x32xf32> to vector<2x32xf32>
    %264 = arith.addf %262, %263 : vector<2x32xf32>
    %265 = arith.mulf %252, %264 : vector<2x32xf32>
    %266 = arith.addf %261, %265 : vector<2x32xf32>
    %267 = math.tanh %266 : vector<2x32xf32>
    %cst_52 = arith.constant 1.000000e+00 : f32
    %268 = vector.broadcast %cst_52 : f32 to vector<2x32xf32>
    %269 = arith.subf %268, %260 : vector<2x32xf32>
    %270 = arith.mulf %269, %267 : vector<2x32xf32>
    %271 = arith.mulf %260, %240 : vector<2x32xf32>
    %272 = arith.addf %270, %271 : vector<2x32xf32>
    %273 = tpu.concatenate %48, %80, %112, %144, %176, %208, %240, %272 in 0 : vector<2x32xf32>, vector<2x32xf32>, vector<2x32xf32>, vector<2x32xf32>, vector<2x32xf32>, vector<2x32xf32>, vector<2x32xf32>, vector<2x32xf32> -> vector<16x32xf32>
    %274 = arith.truncf %273 : vector<16x32xf32> to vector<16x32xbf16>
    %cst_53 = arith.constant dense<0.000000e+00> : vector<16x96xf32>
    %275 = tpu.matmul %274, %1, %cst_53 {dimension_numbers = #tpu.dot_dimension_numbers<[1], [0], [0], [1], [0, 0, 1, 1], [], []>} : vector<16x32xbf16>, vector<32x96xbf16>, vector<16x96xf32> -> vector<16x96xf32>
    %276 = vector.broadcast %4 : vector<1x96xf32> to vector<16x96xf32>
    %277 = arith.addf %275, %276 : vector<16x96xf32>
    %c1 = arith.constant 1 : index
    %c0_54 = arith.constant 0 : index
    %c0_55 = arith.constant 0 : index
    %278 = vector.load %arg1[%c1, %c0_54, %c0_55] : memref<2x2x32xf32, #tpu.memory_space<vmem>>, vector<1x2x32xf32>
    %279 = vector.shape_cast %278 : vector<1x2x32xf32> to vector<2x32xf32>
    %280 = arith.truncf %279 : vector<2x32xf32> to vector<2x32xbf16>
    %cst_56 = arith.constant dense<0.000000e+00> : vector<2x96xf32>
    %281 = tpu.matmul %280, %2, %cst_56 {dimension_numbers = #tpu.dot_dimension_numbers<[1], [0], [0], [1], [0, 0, 1, 1], [], []>} : vector<2x32xbf16>, vector<32x96xbf16>, vector<2x96xf32> -> vector<2x96xf32>
    %282 = vector.extract_strided_slice %277 {offsets = [0, 0], sizes = [2, 96], strides = [1, 1]} : vector<16x96xf32> to vector<2x96xf32>
    %283 = vector.extract_strided_slice %282 {offsets = [0, 0], sizes = [2, 32], strides = [1, 1]} : vector<2x96xf32> to vector<2x32xf32>
    %284 = vector.extract_strided_slice %281 {offsets = [0, 0], sizes = [2, 32], strides = [1, 1]} : vector<2x96xf32> to vector<2x32xf32>
    %285 = arith.addf %283, %284 : vector<2x32xf32>
    %286 = arith.negf %285 : vector<2x32xf32>
    %287 = math.exp %286 : vector<2x32xf32>
    %cst_57 = arith.constant 1.000000e+00 : f32
    %288 = vector.broadcast %cst_57 : f32 to vector<2x32xf32>
    %289 = arith.addf %288, %287 : vector<2x32xf32>
    %290 = arith.divf %288, %289 : vector<2x32xf32>
    %291 = vector.extract_strided_slice %282 {offsets = [0, 32], sizes = [2, 32], strides = [1, 1]} : vector<2x96xf32> to vector<2x32xf32>
    %292 = vector.extract_strided_slice %281 {offsets = [0, 32], sizes = [2, 32], strides = [1, 1]} : vector<2x96xf32> to vector<2x32xf32>
    %293 = arith.addf %291, %292 : vector<2x32xf32>
    %294 = arith.negf %293 : vector<2x32xf32>
    %295 = math.exp %294 : vector<2x32xf32>
    %cst_58 = arith.constant 1.000000e+00 : f32
    %296 = vector.broadcast %cst_58 : f32 to vector<2x32xf32>
    %297 = arith.addf %296, %295 : vector<2x32xf32>
    %298 = arith.divf %296, %297 : vector<2x32xf32>
    %299 = vector.extract_strided_slice %282 {offsets = [0, 64], sizes = [2, 32], strides = [1, 1]} : vector<2x96xf32> to vector<2x32xf32>
    %300 = vector.extract_strided_slice %281 {offsets = [0, 64], sizes = [2, 32], strides = [1, 1]} : vector<2x96xf32> to vector<2x32xf32>
    %301 = vector.broadcast %5 : vector<1x32xf32> to vector<2x32xf32>
    %302 = arith.addf %300, %301 : vector<2x32xf32>
    %303 = arith.mulf %290, %302 : vector<2x32xf32>
    %304 = arith.addf %299, %303 : vector<2x32xf32>
    %305 = math.tanh %304 : vector<2x32xf32>
    %cst_59 = arith.constant 1.000000e+00 : f32
    %306 = vector.broadcast %cst_59 : f32 to vector<2x32xf32>
    %307 = arith.subf %306, %298 : vector<2x32xf32>
    %308 = arith.mulf %307, %305 : vector<2x32xf32>
    %309 = arith.mulf %298, %279 : vector<2x32xf32>
    %310 = arith.addf %308, %309 : vector<2x32xf32>
    %311 = arith.truncf %310 : vector<2x32xf32> to vector<2x32xbf16>
    %cst_60 = arith.constant dense<0.000000e+00> : vector<2x96xf32>
    %312 = tpu.matmul %311, %2, %cst_60 {dimension_numbers = #tpu.dot_dimension_numbers<[1], [0], [0], [1], [0, 0, 1, 1], [], []>} : vector<2x32xbf16>, vector<32x96xbf16>, vector<2x96xf32> -> vector<2x96xf32>
    %313 = vector.extract_strided_slice %277 {offsets = [2, 0], sizes = [2, 96], strides = [1, 1]} : vector<16x96xf32> to vector<2x96xf32>
    %314 = vector.extract_strided_slice %313 {offsets = [0, 0], sizes = [2, 32], strides = [1, 1]} : vector<2x96xf32> to vector<2x32xf32>
    %315 = vector.extract_strided_slice %312 {offsets = [0, 0], sizes = [2, 32], strides = [1, 1]} : vector<2x96xf32> to vector<2x32xf32>
    %316 = arith.addf %314, %315 : vector<2x32xf32>
    %317 = arith.negf %316 : vector<2x32xf32>
    %318 = math.exp %317 : vector<2x32xf32>
    %cst_61 = arith.constant 1.000000e+00 : f32
    %319 = vector.broadcast %cst_61 : f32 to vector<2x32xf32>
    %320 = arith.addf %319, %318 : vector<2x32xf32>
    %321 = arith.divf %319, %320 : vector<2x32xf32>
    %322 = vector.extract_strided_slice %313 {offsets = [0, 32], sizes = [2, 32], strides = [1, 1]} : vector<2x96xf32> to vector<2x32xf32>
    %323 = vector.extract_strided_slice %312 {offsets = [0, 32], sizes = [2, 32], strides = [1, 1]} : vector<2x96xf32> to vector<2x32xf32>
    %324 = arith.addf %322, %323 : vector<2x32xf32>
    %325 = arith.negf %324 : vector<2x32xf32>
    %326 = math.exp %325 : vector<2x32xf32>
    %cst_62 = arith.constant 1.000000e+00 : f32
    %327 = vector.broadcast %cst_62 : f32 to vector<2x32xf32>
    %328 = arith.addf %327, %326 : vector<2x32xf32>
    %329 = arith.divf %327, %328 : vector<2x32xf32>
    %330 = vector.extract_strided_slice %313 {offsets = [0, 64], sizes = [2, 32], strides = [1, 1]} : vector<2x96xf32> to vector<2x32xf32>
    %331 = vector.extract_strided_slice %312 {offsets = [0, 64], sizes = [2, 32], strides = [1, 1]} : vector<2x96xf32> to vector<2x32xf32>
    %332 = vector.broadcast %5 : vector<1x32xf32> to vector<2x32xf32>
    %333 = arith.addf %331, %332 : vector<2x32xf32>
    %334 = arith.mulf %321, %333 : vector<2x32xf32>
    %335 = arith.addf %330, %334 : vector<2x32xf32>
    %336 = math.tanh %335 : vector<2x32xf32>
    %cst_63 = arith.constant 1.000000e+00 : f32
    %337 = vector.broadcast %cst_63 : f32 to vector<2x32xf32>
    %338 = arith.subf %337, %329 : vector<2x32xf32>
    %339 = arith.mulf %338, %336 : vector<2x32xf32>
    %340 = arith.mulf %329, %310 : vector<2x32xf32>
    %341 = arith.addf %339, %340 : vector<2x32xf32>
    %342 = arith.truncf %341 : vector<2x32xf32> to vector<2x32xbf16>
    %cst_64 = arith.constant dense<0.000000e+00> : vector<2x96xf32>
    %343 = tpu.matmul %342, %2, %cst_64 {dimension_numbers = #tpu.dot_dimension_numbers<[1], [0], [0], [1], [0, 0, 1, 1], [], []>} : vector<2x32xbf16>, vector<32x96xbf16>, vector<2x96xf32> -> vector<2x96xf32>
    %344 = vector.extract_strided_slice %277 {offsets = [4, 0], sizes = [2, 96], strides = [1, 1]} : vector<16x96xf32> to vector<2x96xf32>
    %345 = vector.extract_strided_slice %344 {offsets = [0, 0], sizes = [2, 32], strides = [1, 1]} : vector<2x96xf32> to vector<2x32xf32>
    %346 = vector.extract_strided_slice %343 {offsets = [0, 0], sizes = [2, 32], strides = [1, 1]} : vector<2x96xf32> to vector<2x32xf32>
    %347 = arith.addf %345, %346 : vector<2x32xf32>
    %348 = arith.negf %347 : vector<2x32xf32>
    %349 = math.exp %348 : vector<2x32xf32>
    %cst_65 = arith.constant 1.000000e+00 : f32
    %350 = vector.broadcast %cst_65 : f32 to vector<2x32xf32>
    %351 = arith.addf %350, %349 : vector<2x32xf32>
    %352 = arith.divf %350, %351 : vector<2x32xf32>
    %353 = vector.extract_strided_slice %344 {offsets = [0, 32], sizes = [2, 32], strides = [1, 1]} : vector<2x96xf32> to vector<2x32xf32>
    %354 = vector.extract_strided_slice %343 {offsets = [0, 32], sizes = [2, 32], strides = [1, 1]} : vector<2x96xf32> to vector<2x32xf32>
    %355 = arith.addf %353, %354 : vector<2x32xf32>
    %356 = arith.negf %355 : vector<2x32xf32>
    %357 = math.exp %356 : vector<2x32xf32>
    %cst_66 = arith.constant 1.000000e+00 : f32
    %358 = vector.broadcast %cst_66 : f32 to vector<2x32xf32>
    %359 = arith.addf %358, %357 : vector<2x32xf32>
    %360 = arith.divf %358, %359 : vector<2x32xf32>
    %361 = vector.extract_strided_slice %344 {offsets = [0, 64], sizes = [2, 32], strides = [1, 1]} : vector<2x96xf32> to vector<2x32xf32>
    %362 = vector.extract_strided_slice %343 {offsets = [0, 64], sizes = [2, 32], strides = [1, 1]} : vector<2x96xf32> to vector<2x32xf32>
    %363 = vector.broadcast %5 : vector<1x32xf32> to vector<2x32xf32>
    %364 = arith.addf %362, %363 : vector<2x32xf32>
    %365 = arith.mulf %352, %364 : vector<2x32xf32>
    %366 = arith.addf %361, %365 : vector<2x32xf32>
    %367 = math.tanh %366 : vector<2x32xf32>
    %cst_67 = arith.constant 1.000000e+00 : f32
    %368 = vector.broadcast %cst_67 : f32 to vector<2x32xf32>
    %369 = arith.subf %368, %360 : vector<2x32xf32>
    %370 = arith.mulf %369, %367 : vector<2x32xf32>
    %371 = arith.mulf %360, %341 : vector<2x32xf32>
    %372 = arith.addf %370, %371 : vector<2x32xf32>
    %373 = arith.truncf %372 : vector<2x32xf32> to vector<2x32xbf16>
    %cst_68 = arith.constant dense<0.000000e+00> : vector<2x96xf32>
    %374 = tpu.matmul %373, %2, %cst_68 {dimension_numbers = #tpu.dot_dimension_numbers<[1], [0], [0], [1], [0, 0, 1, 1], [], []>} : vector<2x32xbf16>, vector<32x96xbf16>, vector<2x96xf32> -> vector<2x96xf32>
    %375 = vector.extract_strided_slice %277 {offsets = [6, 0], sizes = [2, 96], strides = [1, 1]} : vector<16x96xf32> to vector<2x96xf32>
    %376 = vector.extract_strided_slice %375 {offsets = [0, 0], sizes = [2, 32], strides = [1, 1]} : vector<2x96xf32> to vector<2x32xf32>
    %377 = vector.extract_strided_slice %374 {offsets = [0, 0], sizes = [2, 32], strides = [1, 1]} : vector<2x96xf32> to vector<2x32xf32>
    %378 = arith.addf %376, %377 : vector<2x32xf32>
    %379 = arith.negf %378 : vector<2x32xf32>
    %380 = math.exp %379 : vector<2x32xf32>
    %cst_69 = arith.constant 1.000000e+00 : f32
    %381 = vector.broadcast %cst_69 : f32 to vector<2x32xf32>
    %382 = arith.addf %381, %380 : vector<2x32xf32>
    %383 = arith.divf %381, %382 : vector<2x32xf32>
    %384 = vector.extract_strided_slice %375 {offsets = [0, 32], sizes = [2, 32], strides = [1, 1]} : vector<2x96xf32> to vector<2x32xf32>
    %385 = vector.extract_strided_slice %374 {offsets = [0, 32], sizes = [2, 32], strides = [1, 1]} : vector<2x96xf32> to vector<2x32xf32>
    %386 = arith.addf %384, %385 : vector<2x32xf32>
    %387 = arith.negf %386 : vector<2x32xf32>
    %388 = math.exp %387 : vector<2x32xf32>
    %cst_70 = arith.constant 1.000000e+00 : f32
    %389 = vector.broadcast %cst_70 : f32 to vector<2x32xf32>
    %390 = arith.addf %389, %388 : vector<2x32xf32>
    %391 = arith.divf %389, %390 : vector<2x32xf32>
    %392 = vector.extract_strided_slice %375 {offsets = [0, 64], sizes = [2, 32], strides = [1, 1]} : vector<2x96xf32> to vector<2x32xf32>
    %393 = vector.extract_strided_slice %374 {offsets = [0, 64], sizes = [2, 32], strides = [1, 1]} : vector<2x96xf32> to vector<2x32xf32>
    %394 = vector.broadcast %5 : vector<1x32xf32> to vector<2x32xf32>
    %395 = arith.addf %393, %394 : vector<2x32xf32>
    %396 = arith.mulf %383, %395 : vector<2x32xf32>
    %397 = arith.addf %392, %396 : vector<2x32xf32>
    %398 = math.tanh %397 : vector<2x32xf32>
    %cst_71 = arith.constant 1.000000e+00 : f32
    %399 = vector.broadcast %cst_71 : f32 to vector<2x32xf32>
    %400 = arith.subf %399, %391 : vector<2x32xf32>
    %401 = arith.mulf %400, %398 : vector<2x32xf32>
    %402 = arith.mulf %391, %372 : vector<2x32xf32>
    %403 = arith.addf %401, %402 : vector<2x32xf32>
    %404 = arith.truncf %403 : vector<2x32xf32> to vector<2x32xbf16>
    %cst_72 = arith.constant dense<0.000000e+00> : vector<2x96xf32>
    %405 = tpu.matmul %404, %2, %cst_72 {dimension_numbers = #tpu.dot_dimension_numbers<[1], [0], [0], [1], [0, 0, 1, 1], [], []>} : vector<2x32xbf16>, vector<32x96xbf16>, vector<2x96xf32> -> vector<2x96xf32>
    %406 = vector.extract_strided_slice %277 {offsets = [8, 0], sizes = [2, 96], strides = [1, 1]} : vector<16x96xf32> to vector<2x96xf32>
    %407 = vector.extract_strided_slice %406 {offsets = [0, 0], sizes = [2, 32], strides = [1, 1]} : vector<2x96xf32> to vector<2x32xf32>
    %408 = vector.extract_strided_slice %405 {offsets = [0, 0], sizes = [2, 32], strides = [1, 1]} : vector<2x96xf32> to vector<2x32xf32>
    %409 = arith.addf %407, %408 : vector<2x32xf32>
    %410 = arith.negf %409 : vector<2x32xf32>
    %411 = math.exp %410 : vector<2x32xf32>
    %cst_73 = arith.constant 1.000000e+00 : f32
    %412 = vector.broadcast %cst_73 : f32 to vector<2x32xf32>
    %413 = arith.addf %412, %411 : vector<2x32xf32>
    %414 = arith.divf %412, %413 : vector<2x32xf32>
    %415 = vector.extract_strided_slice %406 {offsets = [0, 32], sizes = [2, 32], strides = [1, 1]} : vector<2x96xf32> to vector<2x32xf32>
    %416 = vector.extract_strided_slice %405 {offsets = [0, 32], sizes = [2, 32], strides = [1, 1]} : vector<2x96xf32> to vector<2x32xf32>
    %417 = arith.addf %415, %416 : vector<2x32xf32>
    %418 = arith.negf %417 : vector<2x32xf32>
    %419 = math.exp %418 : vector<2x32xf32>
    %cst_74 = arith.constant 1.000000e+00 : f32
    %420 = vector.broadcast %cst_74 : f32 to vector<2x32xf32>
    %421 = arith.addf %420, %419 : vector<2x32xf32>
    %422 = arith.divf %420, %421 : vector<2x32xf32>
    %423 = vector.extract_strided_slice %406 {offsets = [0, 64], sizes = [2, 32], strides = [1, 1]} : vector<2x96xf32> to vector<2x32xf32>
    %424 = vector.extract_strided_slice %405 {offsets = [0, 64], sizes = [2, 32], strides = [1, 1]} : vector<2x96xf32> to vector<2x32xf32>
    %425 = vector.broadcast %5 : vector<1x32xf32> to vector<2x32xf32>
    %426 = arith.addf %424, %425 : vector<2x32xf32>
    %427 = arith.mulf %414, %426 : vector<2x32xf32>
    %428 = arith.addf %423, %427 : vector<2x32xf32>
    %429 = math.tanh %428 : vector<2x32xf32>
    %cst_75 = arith.constant 1.000000e+00 : f32
    %430 = vector.broadcast %cst_75 : f32 to vector<2x32xf32>
    %431 = arith.subf %430, %422 : vector<2x32xf32>
    %432 = arith.mulf %431, %429 : vector<2x32xf32>
    %433 = arith.mulf %422, %403 : vector<2x32xf32>
    %434 = arith.addf %432, %433 : vector<2x32xf32>
    %435 = arith.truncf %434 : vector<2x32xf32> to vector<2x32xbf16>
    %cst_76 = arith.constant dense<0.000000e+00> : vector<2x96xf32>
    %436 = tpu.matmul %435, %2, %cst_76 {dimension_numbers = #tpu.dot_dimension_numbers<[1], [0], [0], [1], [0, 0, 1, 1], [], []>} : vector<2x32xbf16>, vector<32x96xbf16>, vector<2x96xf32> -> vector<2x96xf32>
    %437 = vector.extract_strided_slice %277 {offsets = [10, 0], sizes = [2, 96], strides = [1, 1]} : vector<16x96xf32> to vector<2x96xf32>
    %438 = vector.extract_strided_slice %437 {offsets = [0, 0], sizes = [2, 32], strides = [1, 1]} : vector<2x96xf32> to vector<2x32xf32>
    %439 = vector.extract_strided_slice %436 {offsets = [0, 0], sizes = [2, 32], strides = [1, 1]} : vector<2x96xf32> to vector<2x32xf32>
    %440 = arith.addf %438, %439 : vector<2x32xf32>
    %441 = arith.negf %440 : vector<2x32xf32>
    %442 = math.exp %441 : vector<2x32xf32>
    %cst_77 = arith.constant 1.000000e+00 : f32
    %443 = vector.broadcast %cst_77 : f32 to vector<2x32xf32>
    %444 = arith.addf %443, %442 : vector<2x32xf32>
    %445 = arith.divf %443, %444 : vector<2x32xf32>
    %446 = vector.extract_strided_slice %437 {offsets = [0, 32], sizes = [2, 32], strides = [1, 1]} : vector<2x96xf32> to vector<2x32xf32>
    %447 = vector.extract_strided_slice %436 {offsets = [0, 32], sizes = [2, 32], strides = [1, 1]} : vector<2x96xf32> to vector<2x32xf32>
    %448 = arith.addf %446, %447 : vector<2x32xf32>
    %449 = arith.negf %448 : vector<2x32xf32>
    %450 = math.exp %449 : vector<2x32xf32>
    %cst_78 = arith.constant 1.000000e+00 : f32
    %451 = vector.broadcast %cst_78 : f32 to vector<2x32xf32>
    %452 = arith.addf %451, %450 : vector<2x32xf32>
    %453 = arith.divf %451, %452 : vector<2x32xf32>
    %454 = vector.extract_strided_slice %437 {offsets = [0, 64], sizes = [2, 32], strides = [1, 1]} : vector<2x96xf32> to vector<2x32xf32>
    %455 = vector.extract_strided_slice %436 {offsets = [0, 64], sizes = [2, 32], strides = [1, 1]} : vector<2x96xf32> to vector<2x32xf32>
    %456 = vector.broadcast %5 : vector<1x32xf32> to vector<2x32xf32>
    %457 = arith.addf %455, %456 : vector<2x32xf32>
    %458 = arith.mulf %445, %457 : vector<2x32xf32>
    %459 = arith.addf %454, %458 : vector<2x32xf32>
    %460 = math.tanh %459 : vector<2x32xf32>
    %cst_79 = arith.constant 1.000000e+00 : f32
    %461 = vector.broadcast %cst_79 : f32 to vector<2x32xf32>
    %462 = arith.subf %461, %453 : vector<2x32xf32>
    %463 = arith.mulf %462, %460 : vector<2x32xf32>
    %464 = arith.mulf %453, %434 : vector<2x32xf32>
    %465 = arith.addf %463, %464 : vector<2x32xf32>
    %466 = arith.truncf %465 : vector<2x32xf32> to vector<2x32xbf16>
    %cst_80 = arith.constant dense<0.000000e+00> : vector<2x96xf32>
    %467 = tpu.matmul %466, %2, %cst_80 {dimension_numbers = #tpu.dot_dimension_numbers<[1], [0], [0], [1], [0, 0, 1, 1], [], []>} : vector<2x32xbf16>, vector<32x96xbf16>, vector<2x96xf32> -> vector<2x96xf32>
    %468 = vector.extract_strided_slice %277 {offsets = [12, 0], sizes = [2, 96], strides = [1, 1]} : vector<16x96xf32> to vector<2x96xf32>
    %469 = vector.extract_strided_slice %468 {offsets = [0, 0], sizes = [2, 32], strides = [1, 1]} : vector<2x96xf32> to vector<2x32xf32>
    %470 = vector.extract_strided_slice %467 {offsets = [0, 0], sizes = [2, 32], strides = [1, 1]} : vector<2x96xf32> to vector<2x32xf32>
    %471 = arith.addf %469, %470 : vector<2x32xf32>
    %472 = arith.negf %471 : vector<2x32xf32>
    %473 = math.exp %472 : vector<2x32xf32>
    %cst_81 = arith.constant 1.000000e+00 : f32
    %474 = vector.broadcast %cst_81 : f32 to vector<2x32xf32>
    %475 = arith.addf %474, %473 : vector<2x32xf32>
    %476 = arith.divf %474, %475 : vector<2x32xf32>
    %477 = vector.extract_strided_slice %468 {offsets = [0, 32], sizes = [2, 32], strides = [1, 1]} : vector<2x96xf32> to vector<2x32xf32>
    %478 = vector.extract_strided_slice %467 {offsets = [0, 32], sizes = [2, 32], strides = [1, 1]} : vector<2x96xf32> to vector<2x32xf32>
    %479 = arith.addf %477, %478 : vector<2x32xf32>
    %480 = arith.negf %479 : vector<2x32xf32>
    %481 = math.exp %480 : vector<2x32xf32>
    %cst_82 = arith.constant 1.000000e+00 : f32
    %482 = vector.broadcast %cst_82 : f32 to vector<2x32xf32>
    %483 = arith.addf %482, %481 : vector<2x32xf32>
    %484 = arith.divf %482, %483 : vector<2x32xf32>
    %485 = vector.extract_strided_slice %468 {offsets = [0, 64], sizes = [2, 32], strides = [1, 1]} : vector<2x96xf32> to vector<2x32xf32>
    %486 = vector.extract_strided_slice %467 {offsets = [0, 64], sizes = [2, 32], strides = [1, 1]} : vector<2x96xf32> to vector<2x32xf32>
    %487 = vector.broadcast %5 : vector<1x32xf32> to vector<2x32xf32>
    %488 = arith.addf %486, %487 : vector<2x32xf32>
    %489 = arith.mulf %476, %488 : vector<2x32xf32>
    %490 = arith.addf %485, %489 : vector<2x32xf32>
    %491 = math.tanh %490 : vector<2x32xf32>
    %cst_83 = arith.constant 1.000000e+00 : f32
    %492 = vector.broadcast %cst_83 : f32 to vector<2x32xf32>
    %493 = arith.subf %492, %484 : vector<2x32xf32>
    %494 = arith.mulf %493, %491 : vector<2x32xf32>
    %495 = arith.mulf %484, %465 : vector<2x32xf32>
    %496 = arith.addf %494, %495 : vector<2x32xf32>
    %497 = arith.truncf %496 : vector<2x32xf32> to vector<2x32xbf16>
    %cst_84 = arith.constant dense<0.000000e+00> : vector<2x96xf32>
    %498 = tpu.matmul %497, %2, %cst_84 {dimension_numbers = #tpu.dot_dimension_numbers<[1], [0], [0], [1], [0, 0, 1, 1], [], []>} : vector<2x32xbf16>, vector<32x96xbf16>, vector<2x96xf32> -> vector<2x96xf32>
    %499 = vector.extract_strided_slice %277 {offsets = [14, 0], sizes = [2, 96], strides = [1, 1]} : vector<16x96xf32> to vector<2x96xf32>
    %500 = vector.extract_strided_slice %499 {offsets = [0, 0], sizes = [2, 32], strides = [1, 1]} : vector<2x96xf32> to vector<2x32xf32>
    %501 = vector.extract_strided_slice %498 {offsets = [0, 0], sizes = [2, 32], strides = [1, 1]} : vector<2x96xf32> to vector<2x32xf32>
    %502 = arith.addf %500, %501 : vector<2x32xf32>
    %503 = arith.negf %502 : vector<2x32xf32>
    %504 = math.exp %503 : vector<2x32xf32>
    %cst_85 = arith.constant 1.000000e+00 : f32
    %505 = vector.broadcast %cst_85 : f32 to vector<2x32xf32>
    %506 = arith.addf %505, %504 : vector<2x32xf32>
    %507 = arith.divf %505, %506 : vector<2x32xf32>
    %508 = vector.extract_strided_slice %499 {offsets = [0, 32], sizes = [2, 32], strides = [1, 1]} : vector<2x96xf32> to vector<2x32xf32>
    %509 = vector.extract_strided_slice %498 {offsets = [0, 32], sizes = [2, 32], strides = [1, 1]} : vector<2x96xf32> to vector<2x32xf32>
    %510 = arith.addf %508, %509 : vector<2x32xf32>
    %511 = arith.negf %510 : vector<2x32xf32>
    %512 = math.exp %511 : vector<2x32xf32>
    %cst_86 = arith.constant 1.000000e+00 : f32
    %513 = vector.broadcast %cst_86 : f32 to vector<2x32xf32>
    %514 = arith.addf %513, %512 : vector<2x32xf32>
    %515 = arith.divf %513, %514 : vector<2x32xf32>
    %516 = vector.extract_strided_slice %499 {offsets = [0, 64], sizes = [2, 32], strides = [1, 1]} : vector<2x96xf32> to vector<2x32xf32>
    %517 = vector.extract_strided_slice %498 {offsets = [0, 64], sizes = [2, 32], strides = [1, 1]} : vector<2x96xf32> to vector<2x32xf32>
    %518 = vector.broadcast %5 : vector<1x32xf32> to vector<2x32xf32>
    %519 = arith.addf %517, %518 : vector<2x32xf32>
    %520 = arith.mulf %507, %519 : vector<2x32xf32>
    %521 = arith.addf %516, %520 : vector<2x32xf32>
    %522 = math.tanh %521 : vector<2x32xf32>
    %cst_87 = arith.constant 1.000000e+00 : f32
    %523 = vector.broadcast %cst_87 : f32 to vector<2x32xf32>
    %524 = arith.subf %523, %515 : vector<2x32xf32>
    %525 = arith.mulf %524, %522 : vector<2x32xf32>
    %526 = arith.mulf %515, %496 : vector<2x32xf32>
    %527 = arith.addf %525, %526 : vector<2x32xf32>
    %528 = vector.shape_cast %310 : vector<2x32xf32> to vector<2x1x32xf32>
    %529 = vector.shape_cast %341 : vector<2x32xf32> to vector<2x1x32xf32>
    %530 = vector.shape_cast %372 : vector<2x32xf32> to vector<2x1x32xf32>
    %531 = vector.shape_cast %403 : vector<2x32xf32> to vector<2x1x32xf32>
    %532 = vector.shape_cast %434 : vector<2x32xf32> to vector<2x1x32xf32>
    %533 = vector.shape_cast %465 : vector<2x32xf32> to vector<2x1x32xf32>
    %534 = vector.shape_cast %496 : vector<2x32xf32> to vector<2x1x32xf32>
    %535 = vector.shape_cast %527 : vector<2x32xf32> to vector<2x1x32xf32>
    %536 = tpu.concatenate %528, %529, %530, %531, %532, %533, %534, %535 in 1 : vector<2x1x32xf32>, vector<2x1x32xf32>, vector<2x1x32xf32>, vector<2x1x32xf32>, vector<2x1x32xf32>, vector<2x1x32xf32>, vector<2x1x32xf32>, vector<2x1x32xf32> -> vector<2x8x32xf32>
    %537 = vector.shape_cast %536 : vector<2x8x32xf32> to vector<16x32xf32>
    %538 = arith.truncf %537 : vector<16x32xf32> to vector<16x32xbf16>
    %c0_88 = arith.constant 0 : index
    %c0_89 = arith.constant 0 : index
    %539 = vector.load %arg10[%c0_88, %c0_89] : memref<32x10xbf16, #tpu.memory_space<vmem>>, vector<32x10xbf16>
    %cst_90 = arith.constant dense<0.000000e+00> : vector<16x10xf32>
    %540 = tpu.matmul %538, %539, %cst_90 {dimension_numbers = #tpu.dot_dimension_numbers<[1], [0], [0], [1], [0, 0, 1, 1], [], []>} : vector<16x32xbf16>, vector<32x10xbf16>, vector<16x10xf32> -> vector<16x10xf32>
    %c0_91 = arith.constant 0 : index
    %c0_92 = arith.constant 0 : index
    %541 = vector.load %arg11[%c0_91, %c0_92] : memref<1x10xf32, #tpu.memory_space<vmem>>, vector<1x10xf32>
    %542 = vector.broadcast %541 : vector<1x10xf32> to vector<16x10xf32>
    %543 = arith.addf %540, %542 : vector<16x10xf32>
    %c0_93 = arith.constant 0 : index
    %c0_94 = arith.constant 0 : index
    %544 = vector.load %arg12[%c0_93, %c0_94] : memref<16x10xf32, #tpu.memory_space<vmem>>, vector<16x10xf32>
    tpu.vector_store %arg12[%c0_93, %c0_94], %543 {strides = array<i32>} : memref<16x10xf32, #tpu.memory_space<vmem>>, vector<16x10xf32>,
    %c0_95 = arith.constant 0 : index
    %c0_96 = arith.constant 0 : index
    %c0_97 = arith.constant 0 : index
    %545 = vector.load %arg13[%c0_95, %c0_96, %c0_97] : memref<2x2x32xf32, #tpu.memory_space<vmem>>, vector<1x2x32xf32>
    %546 = vector.shape_cast %545 : vector<1x2x32xf32> to vector<2x32xf32>
    %547 = vector.shape_cast %272 : vector<2x32xf32> to vector<1x2x32xf32>
    tpu.vector_store %arg13[%c0_95, %c0_96, %c0_97], %547 {strides = array<i32>} : memref<2x2x32xf32, #tpu.memory_space<vmem>>, vector<1x2x32xf32>,
    %c1_98 = arith.constant 1 : index
    %c0_99 = arith.constant 0 : index
    %c0_100 = arith.constant 0 : index
    %548 = vector.load %arg13[%c1_98, %c0_99, %c0_100] : memref<2x2x32xf32, #tpu.memory_space<vmem>>, vector<1x2x32xf32>
    %549 = vector.shape_cast %548 : vector<1x2x32xf32> to vector<2x32xf32>
    %550 = vector.shape_cast %527 : vector<2x32xf32> to vector<1x2x32xf32>
    tpu.vector_store %arg13[%c1_98, %c0_99, %c0_100], %550 {strides = array<i32>} : memref<2x2x32xf32, #tpu.memory_space<vmem>>, vector<1x2x32xf32>,
    return
  }
}

</mosaic_0001>

<bundles_post_ra>
// kernel: decoder_rnn_forward.1
= control target key start
LH: loop header
LB: loop body
LE: loop exit
PB: predicated region body
PF: predicated region fallthrough
CT: control target
= control target key end

     0   :  { %v2711_v1 = vmov 0.0   ;;  %vm2712_vm0 = vmmov 0   ;;  %vm84_vm1 = vcmask 130048   ;;  %vm143_vm2 = vcmask 261120   ;;  %s3360_s0 = inlined_call_operand.vmem [shape: f32[2,8,16], index: 0, kind: input, shape index: {}]   ;;  %s3361_s1 = inlined_call_operand.vmem [shape: f32[2,2,32], index: 1, kind: input, shape index: {}]   ;;  %s3362_s2 = inlined_call_operand.vmem [shape: bf16[16,96], index: 2, kind: input, shape index: {}]   ;;  %s3363_s3 = inlined_call_operand.vmem [shape: bf16[32,96], index: 3, kind: input, shape index: {}]   ;;  %s3364_s4 = inlined_call_operand.vmem [shape: bf16[32,96], index: 4, kind: input, shape index: {}]   ;;  %s3365_s5 = inlined_call_operand.vmem [shape: bf16[32,96], index: 5, kind: input, shape index: {}]   ;;  %s3366_s6 = inlined_call_operand.vmem [shape: f32[1,96], index: 6, kind: input, shape index: {}]   ;;  %s3367_s7 = inlined_call_operand.vmem [shape: f32[1,32], index: 7, kind: input, shape index: {}]   ;;  %s3368_s8 = inlined_call_operand.vmem [shape: f32[1,96], index: 8, kind: input, shape index: {}]   ;;  %s3369_s9 = inlined_call_operand.vmem [shape: f32[1,32], index: 9, kind: input, shape index: {}]   ;;  %s3370_s10 = inlined_call_operand.vmem [shape: bf16[32,10], index: 10, kind: input, shape index: {}]   ;;  %s3371_s11 = inlined_call_operand.vmem [shape: f32[1,10], index: 11, kind: input, shape index: {}]   ;;  %s3372_s12 = inlined_call_operand.vmem [shape: f32[16,10], index: 12, kind: output, shape index: {0}]   ;;  %s3373_s13 = inlined_call_operand.hbm [shape: f32[2,2,32], index: 13, kind: output, shape index: {1}]  }
   0x1   :  { %v2792_v0 = vld [vmem:[%s3363_s3] sm:$0xff]   ;;  %2382 = vmatprep.subr.bf16.mxu1 %v2711_v1  ;;  %2376 = vmatprep.subr.bf16.mxu0 %v2711_v1  ;;  %v2805_v3 = vld [vmem:[%s3363_s3 + $0x8] sm:$0xff]  }
   0x2   :  { %v2535_v2 = vld [vmem:[%s3362_s2] sm:$0xff]   ;;  %2383 = vmatpush3.bf16.msra.mxu1 %v2792_v0  ;;  %2378 = vmatprep.mubr.msk.bf16.mxu0 %vm2712_vm0, %v2711_v1  ;;  %v61_v5 = vld [vmem:[%s3360_s0 + $0x8] sm:$0xff] }
   0x3   :  { %2377 = vmatpush3.bf16.msra.mxu0 %v2535_v2  ;;  %2384 = vmatprep.subr.bf16.mxu1 %v2711_v1  ;;  %v60_v4 = vld [vmem:[%s3360_s0] sm:$0xff]  ;;  %s2713_s0 = smov 64  }
   0x4   :  { %v2817_v6 = vld [vmem:[%s3361_s1] sm:$0x3]  ;;  %v2319_v7 = vpack.c.bf16 %v61_v5, %v60_v4  ;;  %2386 = vmatprep.mubr.msk.bf16.mxu1 %vm2712_vm0, %v2711_v1  ;;  %2390 = vmatprep.subr.bf16.mxu0 %v2711_v1 }
   0x5   :  { %v2269_v8 = vld [vmem:[%s3367_s7] ss:$0 sm:$0xff]  ;;  %v130_v9 = vpack.c.bf16 %v2817_v6, %v2817_v6 }
   0x6   :  { %210 = vrot.lane.b32.xlu0 %v2269_v8, %s2713_s0  ;;  %2385 = vmatpush3.bf16.msra.mxu1 %v2805_v3 }
   0x7   :  { %2379 = vmatmul.mubr.msk.bf16.vlgmr.msra.gmra.mrb[0].mxu0 %vm84_vm1, %v2319_v7  ;;  %2398 = vmatprep.subr.bf16.mxu1 %v2711_v1 }
   0x8   :  { %2391 = vmatpush3.bf16.msra.mxu0 %v2792_v0  ;;  %2394 = vmatprep.mubr.msk.bf16.mxu0 %vm2712_vm0, %v2711_v1 }
   0x9   :  { %2392 = vmatprep.subr.bf16.mxu0 %v2711_v1 }
   0xa   :  { %19 = vsyncpa [#allocation3], 0  ;;  %2387 = vmatmul.mubr.msk.bf16.vlgmr.msra.gmra.mrb[0].mxu1 %vm143_vm2, %v130_v9  ;;  %v2260_v21 = vld [vmem:[%s3366_s6] ss:$0 sm:$0xff]  ;;  %v249_v39 = vrot.slane %v2817_v6, 1  ;;  %s2714_s6 = smov 32  }
   0xb   :  { %2399 = vmatpush3.bf16.msra.mxu1 %v2792_v0  ;;  %2402 = vmatprep.mubr.msk.bf16.mxu1 %vm2712_vm0, %v2711_v1  ;;  %s2715_s21 = smov 96   ;;  %vm267_vm3 = vcmask 1041409   ;;  %vm1100_vm4 = vcmask 1043459   ;;  %vm1130_vm5 = vcmask 1041408   ;;  %vm1105_vm6 = vcmask 1045509  }
   0xc   :  { %2393 = vmatpush3.bf16.msra.mxu0 %v2805_v3  ;;  %2400 = vmatprep.subr.bf16.mxu1 %v2711_v1  ;;  %vm1132_vm7 = vcmask 1043456   ;;  %vm1110_vm8 = vcmask 1047559   ;;  %vm1134_vm9 = vcmask 1045504   ;;  %vm2131_vm10 = vcmask 1040384  }
   0xd   :  { %2406 = vmatprep.subr.bf16.mxu0 %v2711_v1  ;;  %vm2136_vm11 = vcmask 1042432   ;;  %vm2141_vm12 = vcmask 1044480   ;;  %vm2230_vm13 = vcmask 261127   ;;  %vm2146_vm14 = vcmask 1046528  }
   0xe   :  { %vm2238_vm15 = vcmask 261126  }
   0xf   :  { %2401 = vmatpush3.bf16.msra.mxu1 %v2805_v3 }
  0x10   :  { %2414 = vmatprep.subr.bf16.mxu1 %v2711_v1 }
  0x78   :  { %v2843_v12 = vpop.permute.xlu0 %210 }
  0xda   :  { %v122_v10 = vpop.f32.mrb[0].mxu0 }
  0xdb   :  { %v2380_v11 = vpop.f32.mrb[1].mxu0  ;;  %v2851_v22 = vadd.f32 %v2260_v21, %v122_v10 }
  0xdc   :  { %v125_v13 = vpop.f32.mrb[2].mxu0 }
  0xdd   :  { %v181_v14 = vpop.f32.mrb[0].mxu1  ;;  %v2381_v15 = vpop.f32.mrb[3].mxu0  ;;  %v2853_v23 = vadd.f32 %v2260_v21, %v125_v13 }
  0xde   :  { %v2388_v16 = vpop.f32.mrb[1].mxu1  ;;  %v213_v17 = vadd.f32 %v2843_v12, %v181_v14  ;;  %v188_v24 = vrot.slane %v181_v14, 1  ;;  %v191_v25 = vadd.f32 %v181_v14, %v2851_v22 }
  0xdf   :  { %v184_v18 = vpop.f32.mrb[2].mxu1 }
  0xe0   :  { %216 = vrot.lane.b32.xlu1 %v213_v17, %s2713_s0  ;;  %v215_v19 = vrot.slane %v213_v17, 1  ;;  %v2389_v20 = vpop.f32.mrb[3].mxu1  ;;  %v192_v26 = vadd.f32 %v188_v24, %v2853_v23  ;;  %v2267_v27 = vmul.f32 -1.442695, %v191_v25 }
  0xe2   :  { %218 = vrot.lane.b32.xlu0 %v215_v19, %s2713_s0  ;;  %v2268_v28 = vmul.f32 -1.442695, %v192_v26  ;;  %2543 = vpow2.f32 %v2267_v27 }
  0xe4   :  { %2545 = vpow2.f32 %v2268_v28 }
  0xec   :  { %v2544_v29 = vpop.eup %2543 }
  0xed   :  { %v199_v31 = vadd.f32 1.0, %v2544_v29 }
  0xee   :  { %v2546_v30 = vpop.eup %2545 }
  0xef   :  { %v200_v32 = vadd.f32 1.0, %v2546_v30  ;;  %2547 = vrcp.f32 %v199_v31 }
  0xf1   :  { %2549 = vrcp.f32 %v200_v32 }
  0xf9   :  { %v2548_v33 = vpop.eup %2547 }
  0xfa   :  { %v236_v53 = vsub.f32 1.0, %v2548_v33 }
  0xfb   :  { %v2550_v36 = vpop.eup %2549 }
  0xfc   :  { %v237_v47 = vsub.f32 1.0, %v2550_v36 }
 0x152   :  { %v217_v34 = vpop.permute.xlu1 %216 }
 0x153   :  { %v222_v35 = vmul.f32 %v2548_v33, %v217_v34 }
 0x154   :  { %v219_v37 = vpop.permute.xlu0 %218 }
 0x155   :  { %v223_v38 = vmul.f32 %v2550_v36, %v219_v37  ;;  %226 = vrot.lane.b32.xlu0 %v222_v35, %s2713_s0 }
 0x157   :  { %228 = vrot.lane.b32.xlu1 %v223_v38, %s2713_s0 }
 0x159   :  { %252 = vrot.lane.b32.xlu0 %v249_v39, %s2714_s6 }
 0x15d   :  { %250 = vrot.lane.b32.xlu0 %v2817_v6, %s2714_s6 }
 0x1c7   :  { %v227_v40 = vpop.permute.xlu0 %226 }
 0x1c8   :  { %v232_v43 = vadd.f32 %v227_v40, %v2851_v22 }
 0x1c9   :  { %v229_v41 = vpop.permute.xlu1 %228 }
 0x1ca   :  { %v233_v42 = vadd.f32 %v229_v41, %v2853_v23 }
 0x1cb   :  { %v253_v46 = vpop.permute.xlu0 %252 }
 0x1cc   :  { %2551 = vtanh.f32 %v233_v42  ;;  %v257_v49 = vmul.f32 %v2550_v36, %v253_v46 }
 0x1cd   :  { %2553 = vtanh.f32 %v232_v43 }
 0x1cf   :  { %v251_v51 = vpop.permute.xlu0 %250 }
 0x1d0   :  { %v256_v55 = vmul.f32 %v2548_v33, %v251_v51 }
 0x1d6   :  { %v2552_v44 = vpop.eup %2551 }
 0x1d7   :  { %242 = vrot.lane.b32.xlu1 %v2552_v44, %s2715_s21  ;;  %v2554_v45 = vpop.eup %2553 }
 0x1db   :  { %240 = vrot.lane.b32.xlu1 %v2554_v45, %s2715_s21 }
 0x249   :  { %v243_v48 = vpop.permute.xlu1 %242 }
 0x24a   :  { %v247_v50 = vmul.f32 %v243_v48, %v237_v47 }
 0x24c   :  { %v2867_v52 = vadd.f32 %v257_v49, %v247_v50 }
 0x24d   :  { %v241_v54 = vpop.permute.xlu1 %240 }
 0x24e   :  { %v261_v56 = vpack.c.bf16 %v2867_v52, %v2867_v52  ;;  %v246_v57 = vmul.f32 %v241_v54, %v236_v53  ;;  %v371_v35 = vrot.slane %v2867_v52, 7 }
 0x250   :  { %v265_v58 = vunpack.c.l.b16 %v261_v56  ;;  %v2871_v59 = vadd.f32 %v256_v55, %v246_v57 }
 0x252   :  { %v260_v60 = vpack.c.bf16 %v2871_v59, %v2871_v59  ;;  %v266_v61 = vrot.slane %v265_v58, 7  ;;  %v370_v41 = vrot.slane %v2871_v59, 7  ;;  %v1097_v51 = vsel %vm267_vm3, %v371_v35, %v2871_v59 }
 0x254   :  { %v264_v62 = vunpack.c.l.b16 %v260_v60 }
 0x256   :  { %v268_v63 = vsel %vm267_vm3, %v266_v61, %v264_v62 }
 0x257   :  { %v269_v2 = vpack.c.b16 %v268_v63, %v268_v63 }
 0x259   :  { %270 = vrot.lane.b32.xlu1 %v269_v2, %s2715_s21 }
 0x2cb   :  { %v271_v4 = vpop.permute.xlu1 %270 }
 0x2cc   :  { %2395 = vmatmul.mubr.msk.bf16.vlgmr.msra.gmra.mrb[4].mxu0 %vm143_vm2, %v271_v4 }
 0x2cd   :  { %2407 = vmatpush3.bf16.msra.mxu0 %v2792_v0  ;;  %2410 = vmatprep.mubr.msk.bf16.mxu0 %vm2712_vm0, %v2711_v1 }
 0x2ce   :  { %2408 = vmatprep.subr.bf16.mxu0 %v2711_v1 }
 0x2d1   :  { %2409 = vmatpush3.bf16.msra.mxu0 %v2805_v3 }
 0x2d2   :  { %2422 = vmatprep.subr.bf16.mxu0 %v2711_v1 }
 0x39f   :  { %v309_v5 = vpop.f32.mrb[4].mxu0 }
 0x3a0   :  { %v333_v6 = vadd.f32 %v309_v5, %v2843_v12  ;;  %v2396_v7 = vpop.f32.mrb[5].mxu0  ;;  %v316_v11 = vrot.slane %v309_v5, 7  ;;  %v320_v13 = vadd.f32 %v309_v5, %v2853_v23 }
 0x3a1   :  { %v312_v8 = vpop.f32.mrb[6].mxu0 }
 0x3a2   :  { %338 = vrot.lane.b32.xlu1 %v333_v6, %s2713_s0  ;;  %v2397_v9 = vpop.f32.mrb[7].mxu0  ;;  %v335_v10 = vrot.slane %v333_v6, 7  ;;  %v319_v14 = vadd.f32 %v316_v11, %v2851_v22  ;;  %v2272_v15 = vmul.f32 -1.442695, %v320_v13 }
 0x3a4   :  { %336 = vrot.lane.b32.xlu0 %v335_v10, %s2713_s0  ;;  %v2271_v16 = vmul.f32 -1.442695, %v319_v14  ;;  %2555 = vpow2.f32 %v2272_v15 }
 0x3a6   :  { %2557 = vpow2.f32 %v2271_v16 }
 0x3ae   :  { %v2556_v17 = vpop.eup %2555 }
 0x3af   :  { %v328_v19 = vadd.f32 1.0, %v2556_v17 }
 0x3b0   :  { %v2558_v18 = vpop.eup %2557 }
 0x3b1   :  { %v327_v20 = vadd.f32 1.0, %v2558_v18  ;;  %2559 = vrcp.f32 %v328_v19 }
 0x3b3   :  { %2561 = vrcp.f32 %v327_v20 }
 0x3bb   :  { %v2560_v21 = vpop.eup %2559 }
 0x3bc   :  { %v357_v36 = vsub.f32 1.0, %v2560_v21  ;;  %v375_v38 = vmul.f32 %v2560_v21, %v371_v35 }
 0x3bd   :  { %v2562_v26 = vpop.eup %2561 }
 0x3be   :  { %v356_v40 = vsub.f32 1.0, %v2562_v26  ;;  %v374_v44 = vmul.f32 %v2562_v26, %v370_v41 }
 0x414   :  { %v339_v24 = vpop.permute.xlu1 %338 }
 0x415   :  { %v343_v25 = vmul.f32 %v2560_v21, %v339_v24 }
 0x416   :  { %v337_v27 = vpop.permute.xlu0 %336 }
 0x417   :  { %v342_v28 = vmul.f32 %v2562_v26, %v337_v27  ;;  %348 = vrot.lane.b32.xlu1 %v343_v25, %s2713_s0 }
 0x419   :  { %346 = vrot.lane.b32.xlu0 %v342_v28, %s2713_s0 }
 0x489   :  { %v349_v29 = vpop.permute.xlu1 %348 }
 0x48a   :  { %v353_v30 = vadd.f32 %v349_v29, %v2853_v23 }
 0x48b   :  { %v347_v31 = vpop.permute.xlu0 %346 }
 0x48c   :  { %2563 = vtanh.f32 %v353_v30  ;;  %v352_v32 = vadd.f32 %v347_v31, %v2851_v22 }
 0x48e   :  { %2565 = vtanh.f32 %v352_v32 }
 0x496   :  { %v2564_v33 = vpop.eup %2563 }
 0x497   :  { %362 = vrot.lane.b32.xlu1 %v2564_v33, %s2715_s21 }
 0x498   :  { %v2566_v34 = vpop.eup %2565 }
 0x499   :  { %360 = vrot.lane.b32.xlu0 %v2566_v34, %s2715_s21 }
 0x509   :  { %v363_v37 = vpop.permute.xlu1 %362 }
 0x50a   :  { %v367_v39 = vmul.f32 %v363_v37, %v357_v36 }
 0x50b   :  { %v361_v42 = vpop.permute.xlu0 %360 }
 0x50c   :  { %v2897_v43 = vadd.f32 %v375_v38, %v367_v39  ;;  %v366_v45 = vmul.f32 %v361_v42, %v356_v40 }
 0x50e   :  { %v2899_v46 = vadd.f32 %v374_v44, %v366_v45  ;;  %v379_v47 = vpack.c.bf16 %v2897_v43, %v2897_v43  ;;  %v1099_v48 = vrot.slane %v2897_v43, 6  ;;  %v490_v32 = vrot.slane %v2897_v43, 7 }
 0x510   :  { %v378_v49 = vpack.c.bf16 %v2899_v46, %v2899_v46  ;;  %v489_v50 = vrot.slane %v2899_v46, 7  ;;  %v383_v55 = vunpack.c.l.b16 %v379_v47 }
 0x512   :  { %v382_v52 = vunpack.c.l.b16 %v378_v49  ;;  %v1101_v53 = vsel %vm1100_vm4, %v1099_v48, %v489_v50 }
 0x513   :  { %v2913_v54 = vsel %vm1130_vm5, %v1097_v51, %v1101_v53 }
 0x514   :  { %v384_v56 = vrot.slane %v382_v52, 1 }
 0x516   :  { %v385_v57 = vsel %vm267_vm3, %v383_v55, %v384_v56 }
 0x517   :  { %v386_v58 = vpack.c.b16 %v385_v57, %v385_v57 }
 0x519   :  { %387 = vrot.lane.b32.xlu0 %v386_v58, %s2715_s21 }
 0x58b   :  { %v388_v60 = vpop.permute.xlu0 %387 }
 0x58c   :  { %2403 = vmatmul.mubr.msk.bf16.vlgmr.msra.gmra.mrb[4].mxu1 %vm143_vm2, %v388_v60 }
 0x58d   :  { %2415 = vmatpush3.bf16.msra.mxu1 %v2792_v0  ;;  %2418 = vmatprep.mubr.msk.bf16.mxu1 %vm2712_vm0, %v2711_v1 }
 0x58e   :  { %2416 = vmatprep.subr.bf16.mxu1 %v2711_v1 }
 0x591   :  { %2417 = vmatpush3.bf16.msra.mxu1 %v2805_v3 }
 0x592   :  { %2430 = vmatprep.subr.bf16.mxu1 %v2711_v1 }
 0x65f   :  { %v426_v59 = vpop.f32.mrb[4].mxu1 }
 0x660   :  { %v451_v61 = vadd.f32 %v426_v59, %v2843_v12  ;;  %v2404_v62 = vpop.f32.mrb[5].mxu1  ;;  %v433_v6 = vrot.slane %v426_v59, 6  ;;  %v434_v7 = vrot.slane %v426_v59, 7 }
 0x661   :  { %v429_v63 = vpop.f32.mrb[6].mxu1 }
 0x662   :  { %v2405_v2 = vpop.f32.mrb[7].mxu1  ;;  %v454_v4 = vrot.slane %v451_v61, 7  ;;  %v453_v5 = vrot.slane %v451_v61, 6  ;;  %v437_v8 = vadd.f32 %v433_v6, %v2851_v22  ;;  %v438_v9 = vadd.f32 %v434_v7, %v2853_v23 }
 0x664   :  { %457 = vrot.lane.b32.xlu0 %v454_v4, %s2713_s0  ;;  %455 = vrot.lane.b32.xlu1 %v453_v5, %s2713_s0  ;;  %v2274_v10 = vmul.f32 -1.442695, %v437_v8  ;;  %v2275_v11 = vmul.f32 -1.442695, %v438_v9 }
 0x666   :  { %2567 = vpow2.f32 %v2274_v10 }
 0x667   :  { %2569 = vpow2.f32 %v2275_v11 }
 0x670   :  { %v2568_v13 = vpop.eup %2567 }
 0x671   :  { %v2570_v14 = vpop.eup %2569  ;;  %v445_v15 = vadd.f32 1.0, %v2568_v13 }
 0x672   :  { %v446_v16 = vadd.f32 1.0, %v2570_v14 }
 0x673   :  { %2571 = vrcp.f32 %v445_v15 }
 0x674   :  { %2573 = vrcp.f32 %v446_v16 }
 0x67d   :  { %v2572_v17 = vpop.eup %2571 }
 0x67e   :  { %v2574_v18 = vpop.eup %2573  ;;  %v475_v34 = vsub.f32 1.0, %v2572_v17  ;;  %v493_v38 = vmul.f32 %v2572_v17, %v489_v50 }
 0x67f   :  { %v476_v31 = vsub.f32 1.0, %v2574_v18  ;;  %v494_v35 = vmul.f32 %v2574_v18, %v490_v32 }
 0x6d6   :  { %v458_v19 = vpop.permute.xlu0 %457  ;;  %v456_v20 = vpop.permute.xlu1 %455 }
 0x6d7   :  { %v462_v21 = vmul.f32 %v2574_v18, %v458_v19  ;;  %v461_v24 = vmul.f32 %v2572_v17, %v456_v20 }
 0x6d9   :  { %467 = vrot.lane.b32.xlu0 %v462_v21, %s2713_s0  ;;  %465 = vrot.lane.b32.xlu1 %v461_v24, %s2713_s0 }
 0x74b   :  { %v468_v25 = vpop.permute.xlu0 %467  ;;  %v466_v26 = vpop.permute.xlu1 %465 }
 0x74c   :  { %v472_v27 = vadd.f32 %v468_v25, %v2853_v23  ;;  %v471_v28 = vadd.f32 %v466_v26, %v2851_v22 }
 0x74e   :  { %2575 = vtanh.f32 %v472_v27 }
 0x74f   :  { %2577 = vtanh.f32 %v471_v28 }
 0x758   :  { %v2576_v29 = vpop.eup %2575 }
 0x759   :  { %v2578_v30 = vpop.eup %2577  ;;  %481 = vrot.lane.b32.xlu0 %v2576_v29, %s2715_s21 }
 0x75a   :  { %479 = vrot.lane.b32.xlu1 %v2578_v30, %s2715_s21 }
 0x7cb   :  { %v482_v33 = vpop.permute.xlu0 %481 }
 0x7cc   :  { %v486_v36 = vmul.f32 %v482_v33, %v476_v31  ;;  %v480_v37 = vpop.permute.xlu1 %479 }
 0x7cd   :  { %v485_v39 = vmul.f32 %v480_v37, %v475_v34 }
 0x7ce   :  { %v2938_v40 = vadd.f32 %v494_v35, %v486_v36 }
 0x7cf   :  { %v2940_v41 = vadd.f32 %v493_v38, %v485_v39 }
 0x7d0   :  { %v498_v42 = vpack.c.bf16 %v2938_v40, %v2938_v40  ;;  %v1104_v44 = vrot.slane %v2938_v40, 5  ;;  %v610_v27 = vrot.slane %v2938_v40, 7 }
 0x7d1   :  { %v497_v43 = vpack.c.bf16 %v2940_v41, %v2940_v41  ;;  %v1103_v45 = vrot.slane %v2940_v41, 6  ;;  %v609_v30 = vrot.slane %v2940_v41, 7 }
 0x7d2   :  { %v502_v47 = vunpack.c.l.b16 %v498_v42 }
 0x7d3   :  { %v501_v46 = vunpack.c.l.b16 %v497_v43  ;;  %v1106_v48 = vsel %vm1105_vm6, %v1104_v44, %v1103_v45 }
 0x7d4   :  { %v504_v49 = vrot.slane %v502_v47, 1  ;;  %v2951_v50 = vsel %vm1132_vm7, %v2913_v54, %v1106_v48 }
 0x7d5   :  { %v503_v51 = vrot.slane %v501_v46, 2 }
 0x7d7   :  { %v505_v52 = vsel %vm267_vm3, %v504_v49, %v503_v51 }
 0x7d8   :  { %v506_v53 = vpack.c.b16 %v505_v52, %v505_v52 }
 0x7da   :  { %507 = vrot.lane.b32.xlu1 %v506_v53, %s2715_s21 }
 0x84c   :  { %v508_v55 = vpop.permute.xlu1 %507 }
 0x84d   :  { %2411 = vmatmul.mubr.msk.bf16.vlgmr.msra.gmra.mrb[8].mxu0 %vm143_vm2, %v508_v55 }
 0x84e   :  { %2423 = vmatpush3.bf16.msra.mxu0 %v2792_v0  ;;  %2426 = vmatprep.mubr.msk.bf16.mxu0 %vm2712_vm0, %v2711_v1 }
 0x84f   :  { %2424 = vmatprep.subr.bf16.mxu0 %v2711_v1 }
 0x852   :  { %2425 = vmatpush3.bf16.msra.mxu0 %v2805_v3 }
 0x853   :  { %2438 = vmatprep.subr.bf16.mxu0 %v2711_v1 }
 0x920   :  { %v546_v54 = vpop.f32.mrb[8].mxu0 }
 0x921   :  { %v571_v56 = vadd.f32 %v546_v54, %v2843_v12  ;;  %v2412_v57 = vpop.f32.mrb[9].mxu0  ;;  %v553_v62 = vrot.slane %v546_v54, 5  ;;  %v554_v63 = vrot.slane %v546_v54, 6 }
 0x922   :  { %v549_v58 = vpop.f32.mrb[10].mxu0 }
 0x923   :  { %v2413_v60 = vpop.f32.mrb[11].mxu0  ;;  %v574_v59 = vrot.slane %v571_v56, 6  ;;  %v573_v61 = vrot.slane %v571_v56, 5  ;;  %v557_v2 = vadd.f32 %v553_v62, %v2851_v22  ;;  %v558_v4 = vadd.f32 %v554_v63, %v2853_v23 }
 0x925   :  { %577 = vrot.lane.b32.xlu1 %v574_v59, %s2713_s0  ;;  %575 = vrot.lane.b32.xlu0 %v573_v61, %s2713_s0  ;;  %v2277_v5 = vmul.f32 -1.442695, %v557_v2  ;;  %v2278_v6 = vmul.f32 -1.442695, %v558_v4 }
 0x927   :  { %2579 = vpow2.f32 %v2277_v5 }
 0x928   :  { %2581 = vpow2.f32 %v2278_v6 }
 0x931   :  { %v2580_v7 = vpop.eup %2579 }
 0x932   :  { %v2582_v8 = vpop.eup %2581  ;;  %v565_v9 = vadd.f32 1.0, %v2580_v7 }
 0x933   :  { %v566_v10 = vadd.f32 1.0, %v2582_v8 }
 0x934   :  { %2583 = vrcp.f32 %v565_v9 }
 0x935   :  { %2585 = vrcp.f32 %v566_v10 }
 0x93e   :  { %v2584_v11 = vpop.eup %2583 }
 0x93f   :  { %v2586_v13 = vpop.eup %2585  ;;  %v595_v29 = vsub.f32 1.0, %v2584_v11  ;;  %v613_v34 = vmul.f32 %v2584_v11, %v609_v30 }
 0x940   :  { %v596_v26 = vsub.f32 1.0, %v2586_v13  ;;  %v614_v31 = vmul.f32 %v2586_v13, %v610_v27 }
 0x997   :  { %v578_v14 = vpop.permute.xlu1 %577  ;;  %v576_v15 = vpop.permute.xlu0 %575 }
 0x998   :  { %v582_v16 = vmul.f32 %v2586_v13, %v578_v14  ;;  %v581_v17 = vmul.f32 %v2584_v11, %v576_v15 }
 0x99a   :  { %587 = vrot.lane.b32.xlu1 %v582_v16, %s2713_s0  ;;  %585 = vrot.lane.b32.xlu0 %v581_v17, %s2713_s0 }
 0xa0c   :  { %v588_v18 = vpop.permute.xlu1 %587  ;;  %v586_v19 = vpop.permute.xlu0 %585 }
 0xa0d   :  { %v592_v20 = vadd.f32 %v588_v18, %v2853_v23  ;;  %v591_v21 = vadd.f32 %v586_v19, %v2851_v22 }
 0xa0f   :  { %2587 = vtanh.f32 %v592_v20 }
 0xa10   :  { %2589 = vtanh.f32 %v591_v21 }
 0xa19   :  { %v2588_v24 = vpop.eup %2587 }
 0xa1a   :  { %v2590_v25 = vpop.eup %2589  ;;  %601 = vrot.lane.b32.xlu1 %v2588_v24, %s2715_s21 }
 0xa1b   :  { %599 = vrot.lane.b32.xlu0 %v2590_v25, %s2715_s21 }
 0xa8c   :  { %v602_v28 = vpop.permute.xlu1 %601 }
 0xa8d   :  { %v606_v32 = vmul.f32 %v602_v28, %v596_v26  ;;  %v600_v33 = vpop.permute.xlu0 %599 }
 0xa8e   :  { %v605_v35 = vmul.f32 %v600_v33, %v595_v29 }
 0xa8f   :  { %v2975_v36 = vadd.f32 %v614_v31, %v606_v32 }
 0xa90   :  { %v2977_v37 = vadd.f32 %v613_v34, %v605_v35 }
 0xa91   :  { %v618_v38 = vpack.c.bf16 %v2975_v36, %v2975_v36  ;;  %v1109_v39 = vrot.slane %v2975_v36, 4  ;;  %v730_v21 = vrot.slane %v2975_v36, 7 }
 0xa92   :  { %v617_v40 = vpack.c.bf16 %v2977_v37, %v2977_v37  ;;  %v1108_v41 = vrot.slane %v2977_v37, 5  ;;  %v729_v26 = vrot.slane %v2977_v37, 7 }
 0xa93   :  { %v622_v42 = vunpack.c.l.b16 %v618_v38 }
 0xa94   :  { %v621_v44 = vunpack.c.l.b16 %v617_v40  ;;  %v1111_v43 = vsel %vm1110_vm8, %v1109_v39, %v1108_v41 }
 0xa95   :  { %v624_v45 = vrot.slane %v622_v42, 2  ;;  %v2988_v47 = vsel %vm1134_vm9, %v2951_v50, %v1111_v43 }
 0xa96   :  { %v623_v46 = vrot.slane %v621_v44, 3 }
 0xa98   :  { %v625_v48 = vsel %vm267_vm3, %v624_v45, %v623_v46 }
 0xa99   :  { %v626_v49 = vpack.c.b16 %v625_v48, %v625_v48 }
 0xa9b   :  { %627 = vrot.lane.b32.xlu0 %v626_v49, %s2715_s21 }
 0xb0d   :  { %v628_v51 = vpop.permute.xlu0 %627 }
 0xb0e   :  { %2419 = vmatmul.mubr.msk.bf16.vlgmr.msra.gmra.mrb[8].mxu1 %vm143_vm2, %v628_v51 }
 0xb0f   :  { %2431 = vmatpush3.bf16.msra.mxu1 %v2792_v0  ;;  %2434 = vmatprep.mubr.msk.bf16.mxu1 %vm2712_vm0, %v2711_v1 }
 0xb10   :  { %2432 = vmatprep.subr.bf16.mxu1 %v2711_v1 }
 0xb13   :  { %2433 = vmatpush3.bf16.msra.mxu1 %v2805_v3 }
 0xb14   :  { %2446 = vmatprep.subr.bf16.mxu1 %v2711_v1 }
 0xbe1   :  { %v666_v50 = vpop.f32.mrb[8].mxu1 }
 0xbe2   :  { %v691_v52 = vadd.f32 %v666_v50, %v2843_v12  ;;  %v2420_v53 = vpop.f32.mrb[9].mxu1  ;;  %v673_v58 = vrot.slane %v666_v50, 4  ;;  %v674_v60 = vrot.slane %v666_v50, 5 }
 0xbe3   :  { %v669_v55 = vpop.f32.mrb[10].mxu1 }
 0xbe4   :  { %v2421_v54 = vpop.f32.mrb[11].mxu1  ;;  %v694_v56 = vrot.slane %v691_v52, 5  ;;  %v693_v57 = vrot.slane %v691_v52, 4  ;;  %v677_v59 = vadd.f32 %v673_v58, %v2851_v22  ;;  %v678_v61 = vadd.f32 %v674_v60, %v2853_v23 }
 0xbe6   :  { %697 = vrot.lane.b32.xlu0 %v694_v56, %s2713_s0  ;;  %695 = vrot.lane.b32.xlu1 %v693_v57, %s2713_s0  ;;  %v2280_v62 = vmul.f32 -1.442695, %v677_v59  ;;  %v2281_v63 = vmul.f32 -1.442695, %v678_v61 }
 0xbe8   :  { %2591 = vpow2.f32 %v2280_v62 }
 0xbe9   :  { %2593 = vpow2.f32 %v2281_v63 }
 0xbf2   :  { %v2592_v2 = vpop.eup %2591 }
 0xbf3   :  { %v2594_v4 = vpop.eup %2593  ;;  %v685_v5 = vadd.f32 1.0, %v2592_v2 }
 0xbf4   :  { %v686_v6 = vadd.f32 1.0, %v2594_v4 }
 0xbf5   :  { %2595 = vrcp.f32 %v685_v5 }
 0xbf6   :  { %2597 = vrcp.f32 %v686_v6 }
 0xbff   :  { %v2596_v7 = vpop.eup %2595 }
 0xc00   :  { %v2598_v8 = vpop.eup %2597  ;;  %v715_v25 = vsub.f32 1.0, %v2596_v7  ;;  %v733_v30 = vmul.f32 %v2596_v7, %v729_v26 }
 0xc01   :  { %v716_v20 = vsub.f32 1.0, %v2598_v8  ;;  %v734_v27 = vmul.f32 %v2598_v8, %v730_v21 }
 0xc58   :  { %v698_v9 = vpop.permute.xlu0 %697  ;;  %v696_v10 = vpop.permute.xlu1 %695 }
 0xc59   :  { %v702_v11 = vmul.f32 %v2598_v8, %v698_v9  ;;  %v701_v13 = vmul.f32 %v2596_v7, %v696_v10 }
 0xc5b   :  { %707 = vrot.lane.b32.xlu0 %v702_v11, %s2713_s0  ;;  %705 = vrot.lane.b32.xlu1 %v701_v13, %s2713_s0 }
 0xccd   :  { %v708_v14 = vpop.permute.xlu0 %707  ;;  %v706_v15 = vpop.permute.xlu1 %705 }
 0xcce   :  { %v712_v16 = vadd.f32 %v708_v14, %v2853_v23  ;;  %v711_v17 = vadd.f32 %v706_v15, %v2851_v22 }
 0xcd0   :  { %2599 = vtanh.f32 %v712_v16 }
 0xcd1   :  { %2601 = vtanh.f32 %v711_v17 }
 0xcda   :  { %v2600_v18 = vpop.eup %2599 }
 0xcdb   :  { %v2602_v19 = vpop.eup %2601  ;;  %721 = vrot.lane.b32.xlu0 %v2600_v18, %s2715_s21 }
 0xcdc   :  { %719 = vrot.lane.b32.xlu1 %v2602_v19, %s2715_s21 }
 0xd4d   :  { %v722_v24 = vpop.permute.xlu0 %721 }
 0xd4e   :  { %v726_v28 = vmul.f32 %v722_v24, %v716_v20  ;;  %v720_v29 = vpop.permute.xlu1 %719 }
 0xd4f   :  { %v725_v31 = vmul.f32 %v720_v29, %v715_v25 }
 0xd50   :  { %v3012_v32 = vadd.f32 %v734_v27, %v726_v28 }
 0xd51   :  { %v3014_v33 = vadd.f32 %v733_v30, %v725_v31 }
 0xd52   :  { %v738_v34 = vpack.c.bf16 %v3012_v32, %v3012_v32  ;;  %v1114_v35 = vrot.slane %v3012_v32, 3  ;;  %v850_v15 = vrot.slane %v3012_v32, 7 }
 0xd53   :  { %v737_v36 = vpack.c.bf16 %v3014_v33, %v3014_v33  ;;  %v1113_v38 = vrot.slane %v3014_v33, 4  ;;  %v849_v18 = vrot.slane %v3014_v33, 7 }
 0xd54   :  { %v742_v37 = vunpack.c.l.b16 %v738_v34 }
 0xd55   :  { %v741_v39 = vunpack.c.l.b16 %v737_v36  ;;  %v3023_v40 = vsel %vm267_vm3, %v1114_v35, %v1113_v38 }
 0xd56   :  { %v744_v41 = vrot.slane %v742_v37, 3 }
 0xd57   :  { %v743_v42 = vrot.slane %v741_v39, 4 }
 0xd59   :  { %v745_v44 = vsel %vm267_vm3, %v744_v41, %v743_v42 }
 0xd5a   :  { %v746_v43 = vpack.c.b16 %v745_v44, %v745_v44 }
 0xd5c   :  { %747 = vrot.lane.b32.xlu1 %v746_v43, %s2715_s21 }
 0xdce   :  { %v748_v45 = vpop.permute.xlu1 %747 }
 0xdcf   :  { %2427 = vmatmul.mubr.msk.bf16.vlgmr.msra.gmra.mrb[12].mxu0 %vm143_vm2, %v748_v45 }
 0xdd0   :  { %2439 = vmatpush3.bf16.msra.mxu0 %v2792_v0  ;;  %2442 = vmatprep.mubr.msk.bf16.mxu0 %vm2712_vm0, %v2711_v1 }
 0xdd1   :  { %2440 = vmatprep.subr.bf16.mxu0 %v2711_v1 }
 0xdd4   :  { %2441 = vmatpush3.bf16.msra.mxu0 %v2805_v3 }
 0xdd5   :  { %2454 = vmatprep.subr.bf16.mxu0 %v2711_v1 }
 0xea2   :  { %v786_v46 = vpop.f32.mrb[12].mxu0 }
 0xea3   :  { %v811_v48 = vadd.f32 %v786_v46, %v2843_v12  ;;  %v2428_v49 = vpop.f32.mrb[13].mxu0  ;;  %v793_v0 = vrot.slane %v786_v46, 3  ;;  %v794_v55 = vrot.slane %v786_v46, 4 }
 0xea4   :  { %v789_v51 = vpop.f32.mrb[14].mxu0 }
 0xea5   :  { %v2429_v50 = vpop.f32.mrb[15].mxu0  ;;  %v814_v52 = vrot.slane %v811_v48, 4  ;;  %v813_v53 = vrot.slane %v811_v48, 3  ;;  %v797_v54 = vadd.f32 %v793_v0, %v2851_v22  ;;  %v798_v3 = vadd.f32 %v794_v55, %v2853_v23 }
 0xea7   :  { %817 = vrot.lane.b32.xlu1 %v814_v52, %s2713_s0  ;;  %815 = vrot.lane.b32.xlu0 %v813_v53, %s2713_s0  ;;  %v2283_v56 = vmul.f32 -1.442695, %v797_v54  ;;  %v2284_v57 = vmul.f32 -1.442695, %v798_v3 }
 0xea9   :  { %2603 = vpow2.f32 %v2283_v56 }
 0xeaa   :  { %2605 = vpow2.f32 %v2284_v57 }
 0xeb3   :  { %v2604_v58 = vpop.eup %2603 }
 0xeb4   :  { %v2606_v60 = vpop.eup %2605  ;;  %v805_v59 = vadd.f32 1.0, %v2604_v58 }
 0xeb5   :  { %v806_v61 = vadd.f32 1.0, %v2606_v60 }
 0xeb6   :  { %2607 = vrcp.f32 %v805_v59 }
 0xeb7   :  { %2609 = vrcp.f32 %v806_v61 }
 0xec0   :  { %v2608_v62 = vpop.eup %2607 }
 0xec1   :  { %v2610_v63 = vpop.eup %2609  ;;  %v835_v17 = vsub.f32 1.0, %v2608_v62  ;;  %v853_v24 = vmul.f32 %v2608_v62, %v849_v18 }
 0xec2   :  { %v836_v14 = vsub.f32 1.0, %v2610_v63  ;;  %v854_v19 = vmul.f32 %v2610_v63, %v850_v15 }
 0xf19   :  { %v818_v2 = vpop.permute.xlu1 %817  ;;  %v816_v4 = vpop.permute.xlu0 %815 }
 0xf1a   :  { %v822_v5 = vmul.f32 %v2610_v63, %v818_v2  ;;  %v821_v6 = vmul.f32 %v2608_v62, %v816_v4 }
 0xf1c   :  { %827 = vrot.lane.b32.xlu1 %v822_v5, %s2713_s0  ;;  %825 = vrot.lane.b32.xlu0 %v821_v6, %s2713_s0 }
 0xf8e   :  { %v828_v7 = vpop.permute.xlu1 %827  ;;  %v826_v8 = vpop.permute.xlu0 %825 }
 0xf8f   :  { %v832_v9 = vadd.f32 %v828_v7, %v2853_v23  ;;  %v831_v10 = vadd.f32 %v826_v8, %v2851_v22 }
 0xf91   :  { %2611 = vtanh.f32 %v832_v9 }
 0xf92   :  { %2613 = vtanh.f32 %v831_v10 }
 0xf9b   :  { %v2612_v11 = vpop.eup %2611 }
 0xf9c   :  { %v2614_v13 = vpop.eup %2613  ;;  %841 = vrot.lane.b32.xlu1 %v2612_v11, %s2715_s21 }
 0xf9d   :  { %839 = vrot.lane.b32.xlu0 %v2614_v13, %s2715_s21 }
0x100e   :  { %v842_v16 = vpop.permute.xlu1 %841 }
0x100f   :  { %v846_v20 = vmul.f32 %v842_v16, %v836_v14  ;;  %v840_v21 = vpop.permute.xlu0 %839 }
0x1010   :  { %v845_v25 = vmul.f32 %v840_v21, %v835_v17 }
0x1011   :  { %v3047_v26 = vadd.f32 %v854_v19, %v846_v20 }
0x1012   :  { %v3049_v27 = vadd.f32 %v853_v24, %v845_v25 }
0x1013   :  { %v858_v28 = vpack.c.bf16 %v3047_v26, %v3047_v26  ;;  %v1118_v29 = vrot.slane %v3047_v26, 2  ;;  %v970_v9 = vrot.slane %v3047_v26, 7 }
0x1014   :  { %v857_v30 = vpack.c.bf16 %v3049_v27, %v3049_v27  ;;  %v1117_v31 = vrot.slane %v3049_v27, 3  ;;  %v969_v13 = vrot.slane %v3049_v27, 7 }
0x1015   :  { %v862_v32 = vunpack.c.l.b16 %v858_v28 }
0x1016   :  { %v861_v33 = vunpack.c.l.b16 %v857_v30  ;;  %v1119_v34 = vsel %vm1100_vm4, %v1118_v29, %v1117_v31 }
0x1017   :  { %v864_v35 = vrot.slane %v862_v32, 4  ;;  %v3060_v36 = vsel %vm1130_vm5, %v3023_v40, %v1119_v34 }
0x1018   :  { %v863_v38 = vrot.slane %v861_v33, 5 }
0x101a   :  { %v865_v37 = vsel %vm267_vm3, %v864_v35, %v863_v38 }
0x101b   :  { %v866_v39 = vpack.c.b16 %v865_v37, %v865_v37 }
0x101d   :  { %867 = vrot.lane.b32.xlu0 %v866_v39, %s2715_s21 }
0x108f   :  { %v868_v41 = vpop.permute.xlu0 %867 }
0x1090   :  { %2435 = vmatmul.mubr.msk.bf16.vlgmr.msra.gmra.mrb[12].mxu1 %vm143_vm2, %v868_v41 }
0x1091   :  { %2450 = vmatprep.mubr.msk.bf16.mxu1 %vm2712_vm0, %v2711_v1 }
0x1163   :  { %v906_v42 = vpop.f32.mrb[12].mxu1 }
0x1164   :  { %v931_v44 = vadd.f32 %v906_v42, %v2843_v12  ;;  %v2436_v43 = vpop.f32.mrb[13].mxu1  ;;  %v913_v49 = vrot.slane %v906_v42, 2  ;;  %v914_v51 = vrot.slane %v906_v42, 3 }
0x1165   :  { %v909_v45 = vpop.f32.mrb[14].mxu1 }
0x1166   :  { %v2437_v46 = vpop.f32.mrb[15].mxu1  ;;  %v934_v40 = vrot.slane %v931_v44, 3  ;;  %v933_v48 = vrot.slane %v931_v44, 2  ;;  %v917_v50 = vadd.f32 %v913_v49, %v2851_v22  ;;  %v918_v52 = vadd.f32 %v914_v51, %v2853_v23 }
0x1168   :  { %937 = vrot.lane.b32.xlu0 %v934_v40, %s2713_s0  ;;  %935 = vrot.lane.b32.xlu1 %v933_v48, %s2713_s0  ;;  %v2286_v53 = vmul.f32 -1.442695, %v917_v50  ;;  %v2287_v0 = vmul.f32 -1.442695, %v918_v52 }
0x116a   :  { %2615 = vpow2.f32 %v2286_v53 }
0x116b   :  { %2617 = vpow2.f32 %v2287_v0 }
0x1174   :  { %v2616_v55 = vpop.eup %2615 }
0x1175   :  { %v2618_v54 = vpop.eup %2617  ;;  %v925_v3 = vadd.f32 1.0, %v2616_v55 }
0x1176   :  { %v926_v56 = vadd.f32 1.0, %v2618_v54 }
0x1177   :  { %2619 = vrcp.f32 %v925_v3 }
0x1178   :  { %2621 = vrcp.f32 %v926_v56 }
0x1181   :  { %v2620_v57 = vpop.eup %2619 }
0x1182   :  { %v2622_v58 = vpop.eup %2621  ;;  %v955_v11 = vsub.f32 1.0, %v2620_v57  ;;  %v973_v17 = vmul.f32 %v2620_v57, %v969_v13 }
0x1183   :  { %v956_v8 = vsub.f32 1.0, %v2622_v58  ;;  %v974_v14 = vmul.f32 %v2622_v58, %v970_v9 }
0x11da   :  { %v938_v60 = vpop.permute.xlu0 %937  ;;  %v936_v59 = vpop.permute.xlu1 %935 }
0x11db   :  { %v942_v61 = vmul.f32 %v2622_v58, %v938_v60  ;;  %v941_v62 = vmul.f32 %v2620_v57, %v936_v59 }
0x11dd   :  { %947 = vrot.lane.b32.xlu0 %v942_v61, %s2713_s0  ;;  %945 = vrot.lane.b32.xlu1 %v941_v62, %s2713_s0  ;;  %v3112_v61 = vld [vmem:[%s3365_s5] sm:$0xff]  }
0x124f   :  { %v948_v63 = vpop.permute.xlu0 %947  ;;  %v946_v2 = vpop.permute.xlu1 %945 }
0x1250   :  { %v952_v4 = vadd.f32 %v948_v63, %v2853_v23  ;;  %v951_v5 = vadd.f32 %v946_v2, %v2851_v22  ;;  %v2539_v63 = vld [vmem:[%s3364_s4] sm:$0xff]  }
0x1251   :  { %2447 = vmatpush3.bf16.msra.mxu1 %v2539_v63 }
0x1252   :  { %2623 = vtanh.f32 %v952_v4  ;;  %v2540_v4 = vld [vmem:[%s3364_s4 + $0x8] sm:$0xff]   ;;  %2448 = vmatprep.subr.bf16.mxu1 %v2711_v1 }
0x1253   :  { %2625 = vtanh.f32 %v951_v5 }
0x1255   :  { %2449 = vmatpush3.bf16.msra.mxu1 %v2540_v4 }
0x1256   :  { %2462 = vmatprep.subr.bf16.mxu1 %v2711_v1 }
0x125c   :  { %v2624_v6 = vpop.eup %2623 }
0x125d   :  { %v2626_v7 = vpop.eup %2625  ;;  %961 = vrot.lane.b32.xlu0 %v2624_v6, %s2715_s21  ;;  %v2300_v6 = vld [vmem:[%s3369_s9] ss:$0 sm:$0xff] }
0x125e   :  { %959 = vrot.lane.b32.xlu1 %v2626_v7, %s2715_s21 }
0x12cf   :  { %v962_v10 = vpop.permute.xlu0 %961 }
0x12d0   :  { %v966_v15 = vmul.f32 %v962_v10, %v956_v8  ;;  %v960_v16 = vpop.permute.xlu1 %959 }
0x12d1   :  { %v965_v18 = vmul.f32 %v960_v16, %v955_v11 }
0x12d2   :  { %v3080_v19 = vadd.f32 %v974_v14, %v966_v15 }
0x12d3   :  { %v3082_v20 = vadd.f32 %v973_v17, %v965_v18 }
0x12d4   :  { %v978_v21 = vpack.c.bf16 %v3080_v19, %v3080_v19  ;;  %v1122_v24 = vrot.slane %v3080_v19, 1  ;;  %v1090_v13 = vrot.slane %v3080_v19, 7 }
0x12d5   :  { %v977_v25 = vpack.c.bf16 %v3082_v20, %v3082_v20  ;;  %v1121_v26 = vrot.slane %v3082_v20, 2  ;;  %v1089_v10 = vrot.slane %v3082_v20, 7 }
0x12d6   :  { %v982_v27 = vunpack.c.l.b16 %v978_v21 }
0x12d7   :  { %v981_v28 = vunpack.c.l.b16 %v977_v25  ;;  %v1123_v29 = vsel %vm1105_vm6, %v1122_v24, %v1121_v26 }
0x12d8   :  { %v984_v30 = vrot.slane %v982_v27, 5  ;;  %v3093_v31 = vsel %vm1132_vm7, %v3060_v36, %v1123_v29 }
0x12d9   :  { %v983_v32 = vrot.slane %v981_v28, 6 }
0x12db   :  { %v985_v33 = vsel %vm267_vm3, %v984_v30, %v983_v32 }
0x12dc   :  { %v986_v34 = vpack.c.b16 %v985_v33, %v985_v33 }
0x12de   :  { %987 = vrot.lane.b32.xlu1 %v986_v34, %s2715_s21 }
0x1350   :  { %v988_v35 = vpop.permute.xlu1 %987 }
0x1351   :  { %2443 = vmatmul.mubr.msk.bf16.vlgmr.msra.gmra.mrb[16].mxu0 %vm143_vm2, %v988_v35 }
0x1352   :  { %2458 = vmatprep.mubr.msk.bf16.mxu0 %vm2712_vm0, %v2711_v1  ;;  %2455 = vmatpush3.bf16.msra.mxu0 %v3112_v61 }
0x1353   :  { %2456 = vmatprep.subr.bf16.mxu0 %v2711_v1 }
0x1424   :  { %v1026_v38 = vpop.f32.mrb[16].mxu0 }
0x1425   :  { %v1051_v37 = vadd.f32 %v1026_v38, %v2843_v12  ;;  %v2444_v39 = vpop.f32.mrb[17].mxu0  ;;  %v1033_v43 = vrot.slane %v1026_v38, 1  ;;  %v1034_v45 = vrot.slane %v1026_v38, 2 }
0x1426   :  { %v1029_v41 = vpop.f32.mrb[18].mxu0 }
0x1427   :  { %v2445_v42 = vpop.f32.mrb[19].mxu0  ;;  %v1054_v36 = vrot.slane %v1051_v37, 2  ;;  %v1053_v44 = vrot.slane %v1051_v37, 1  ;;  %v1037_v46 = vadd.f32 %v1033_v43, %v2851_v22  ;;  %v1038_v40 = vadd.f32 %v1034_v45, %v2853_v23 }
0x1429   :  { %1057 = vrot.lane.b32.xlu1 %v1054_v36, %s2713_s0  ;;  %1055 = vrot.lane.b32.xlu0 %v1053_v44, %s2713_s0  ;;  %v2289_v48 = vmul.f32 -1.442695, %v1037_v46  ;;  %v2290_v49 = vmul.f32 -1.442695, %v1038_v40 }
0x142b   :  { %2627 = vpow2.f32 %v2289_v48 }
0x142c   :  { %2629 = vpow2.f32 %v2290_v49 }
0x1435   :  { %v2628_v12 = vpop.eup %2627 }
0x1436   :  { %v2630_v51 = vpop.eup %2629  ;;  %v1045_v50 = vadd.f32 1.0, %v2628_v12 }
0x1437   :  { %v1046_v52 = vadd.f32 1.0, %v2630_v51 }
0x1438   :  { %2631 = vrcp.f32 %v1045_v50 }
0x1439   :  { %2633 = vrcp.f32 %v1046_v52 }
0x1442   :  { %v2632_v53 = vpop.eup %2631 }
0x1443   :  { %v2634_v0 = vpop.eup %2633  ;;  %v1075_v9 = vsub.f32 1.0, %v2632_v53  ;;  %v1093_v15 = vmul.f32 %v2632_v53, %v1089_v10 }
0x1444   :  { %v1076_v7 = vsub.f32 1.0, %v2634_v0  ;;  %v1094_v17 = vmul.f32 %v2634_v0, %v1090_v13 }
0x149b   :  { %v1058_v55 = vpop.permute.xlu1 %1057  ;;  %v1056_v54 = vpop.permute.xlu0 %1055 }
0x149c   :  { %v1062_v3 = vmul.f32 %v2634_v0, %v1058_v55  ;;  %v1061_v56 = vmul.f32 %v2632_v53, %v1056_v54 }
0x149e   :  { %1067 = vrot.lane.b32.xlu1 %v1062_v3, %s2713_s0  ;;  %1065 = vrot.lane.b32.xlu0 %v1061_v56, %s2713_s0 }
0x1510   :  { %v1068_v57 = vpop.permute.xlu1 %1067  ;;  %v1066_v58 = vpop.permute.xlu0 %1065 }
0x1511   :  { %v1072_v60 = vadd.f32 %v1068_v57, %v2853_v23  ;;  %v1071_v59 = vadd.f32 %v1066_v58, %v2851_v22  ;;  %v3122_v22 = vld [vmem:[%s3365_s5 + $0x8] sm:$0xff]   ;;  %v3127_v23 = vld [vmem:[%s3361_s1 + $0x2] sm:$0x3] }
0x1512   :  { %v1207_v5 = vpack.c.bf16 %v3127_v23, %v3127_v23  ;;  %2457 = vmatpush3.bf16.msra.mxu0 %v3122_v22 }
0x1513   :  { %2635 = vtanh.f32 %v1072_v60  ;;  %2470 = vmatprep.subr.bf16.mxu0 %v2711_v1 }
0x1514   :  { %2637 = vtanh.f32 %v1071_v59 }
0x1515   :  { %2459 = vmatmul.mubr.msk.bf16.vlgmr.msra.gmra.mrb[20].mxu0 %vm143_vm2, %v1207_v5 }
0x1516   :  { %2471 = vmatpush3.bf16.msra.mxu0 %v3112_v61  ;;  %2474 = vmatprep.mubr.msk.bf16.mxu0 %vm2712_vm0, %v2711_v1 }
0x1517   :  { %2472 = vmatprep.subr.bf16.mxu0 %v2711_v1 }
0x151a   :  { %2473 = vmatpush3.bf16.msra.mxu0 %v3122_v22 }
0x151b   :  { %2486 = vmatprep.subr.bf16.mxu0 %v2711_v1 }
0x151d   :  { %v2636_v62 = vpop.eup %2635 }
0x151e   :  { %v2638_v2 = vpop.eup %2637  ;;  %1081 = vrot.lane.b32.xlu1 %v2636_v62, %s2715_s21 }
0x151f   :  { %1079 = vrot.lane.b32.xlu0 %v2638_v2, %s2715_s21 }
0x1522   :  { %1275 = vrot.lane.b32.xlu1 %v2300_v6, %s2713_s0 }
0x1590   :  { %v1082_v8 = vpop.permute.xlu1 %1081 }
0x1591   :  { %v1080_v11 = vpop.permute.xlu0 %1079  ;;  %v1086_v14 = vmul.f32 %v1082_v8, %v1076_v7 }
0x1592   :  { %v1085_v16 = vmul.f32 %v1080_v11, %v1075_v9  ;;  %v2716_v11 = vmov 1966171168  }
0x1593   :  { %v3155_v21 = vadd.f32 %v1094_v17, %v1086_v14  ;;  %v1871_v13 = vunpack.c.l.s4 %v2716_v11  ;;  %v1873_v14 = vlaneseq }
0x1594   :  { %v3153_v18 = vadd.f32 %v1093_v15, %v1085_v16  ;;  %v3164_v30 = vpop.permute.xlu1 %1275 }
0x1595   :  { %v1872_v15 = vunpack.c.0.s8 %v1871_v13  ;;  %v1874_v16 = vshrl.u32 %v1873_v14, 7 }
0x1596   :  { %v1127_v24 = vrot.slane %v3153_v18, 1 }
0x1598   :  { %v1128_v25 = vsel %vm1110_vm8, %v3155_v21, %v1127_v24 }
0x1599   :  { %v1138_v20 = vsel %vm1134_vm9, %v3093_v31, %v1128_v25 }
0x159a   :  { %v1139_v26 = vpack.c.bf16 %v1138_v20, %v2988_v47  ;;  %v2291_v47 = vld [vmem:[%s3368_s8] ss:$0 sm:$0xff]  ;;  %v3202_v20 = vsub.s32 %v1872_v15, %v1874_v16 }
0x159c   :  { %1147 = vrot.lane.b32.xlu0 %v1139_v26, %s2715_s21 }
0x15e8   :  { %v1257_v19 = vpop.f32.mrb[20].mxu0 }
0x15e9   :  { %v2460_v27 = vpop.f32.mrb[21].mxu0  ;;  %v1278_v32 = vadd.f32 %v3164_v30, %v1257_v19 }
0x15ea   :  { %v1260_v28 = vpop.f32.mrb[22].mxu0 }
0x15eb   :  { %v2461_v29 = vpop.f32.mrb[23].mxu0  ;;  %1280 = vrot.lane.b32.xlu0 %v1278_v32, %s2713_s0 }
0x160e   :  { %v1148_v33 = vpop.permute.xlu0 %1147 }
0x160f   :  { %2451 = vmatmul.mubr.msk.bf16.vlgmr.msra.gmra.mrb[16].mxu1 %vm143_vm2, %v1148_v33  ;;  %v3206_v33 = vsub.s32 0, %v1874_v16 }
0x1610   :  { %2463 = vmatpush3.bf16.msra.mxu1 %v3112_v61  ;;  %2466 = vmatprep.mubr.msk.bf16.mxu1 %vm2712_vm0, %v2711_v1 }
0x1611   :  { %2464 = vmatprep.subr.bf16.mxu1 %v2711_v1 }
0x1614   :  { %2465 = vmatpush3.bf16.msra.mxu1 %v3122_v22 }
0x1615   :  { %2478 = vmatprep.subr.bf16.mxu1 %v2711_v1 }
0x165d   :  { %v1281_v43 = vpop.permute.xlu0 %1280 }
0x16e2   :  { %v1198_v31 = vpop.f32.mrb[16].mxu1 }
0x16e3   :  { %v3178_v34 = vadd.f32 %v2291_v47, %v1198_v31  ;;  %v2452_v35 = vpop.f32.mrb[17].mxu1 }
0x16e4   :  { %v1201_v38 = vpop.f32.mrb[18].mxu1 }
0x16e5   :  { %v3180_v37 = vadd.f32 %v2291_v47, %v1201_v38  ;;  %v2453_v39 = vpop.f32.mrb[19].mxu1  ;;  %v1263_v41 = vadd.f32 %v1257_v19, %v3178_v34 }
0x16e7   :  { %v2299_v42 = vmul.f32 -1.442695, %v1263_v41 }
0x16e9   :  { %2639 = vpow2.f32 %v2299_v42 }
0x16f3   :  { %v2640_v36 = vpop.eup %2639 }
0x16f4   :  { %v1267_v44 = vadd.f32 1.0, %v2640_v36 }
0x16f6   :  { %2641 = vrcp.f32 %v1267_v44 }
0x1700   :  { %v2642_v45 = vpop.eup %2641 }
0x1701   :  { %v1283_v46 = vmul.f32 %v2642_v45, %v1281_v43  ;;  %v1290_v51 = vsub.f32 1.0, %v2642_v45 }
0x1703   :  { %1285 = vrot.lane.b32.xlu1 %v1283_v46, %s2713_s0 }
0x1707   :  { %1297 = vrot.lane.b32.xlu1 %v3127_v23, %s2714_s6 }
0x1775   :  { %v1286_v40 = vpop.permute.xlu1 %1285 }
0x1776   :  { %v1288_v48 = vadd.f32 %v1286_v40, %v3178_v34 }
0x1778   :  { %2643 = vtanh.f32 %v1288_v48 }
0x1779   :  { %v1298_v12 = vpop.permute.xlu1 %1297 }
0x177a   :  { %v1300_v52 = vmul.f32 %v2642_v45, %v1298_v12 }
0x1782   :  { %v2644_v49 = vpop.eup %2643 }
0x1783   :  { %1292 = vrot.lane.b32.xlu0 %v2644_v49, %s2715_s21 }
0x17f5   :  { %v1293_v50 = vpop.permute.xlu0 %1292 }
0x17f6   :  { %v1295_v53 = vmul.f32 %v1293_v50, %v1290_v51 }
0x17f8   :  { %v1301_v0 = vadd.f32 %v1300_v52, %v1295_v53 }
0x17fa   :  { %v1302_v55 = vpack.c.bf16 %v1301_v0, %v1301_v0  ;;  %v1379_v24 = vrot.slane %v1301_v0, 6  ;;  %v1876_v28 = vrot.slane %v1301_v0, %v3202_v20 }
0x17fc   :  { %1304 = vrot.lane.b32.xlu0 %v1302_v55, %s2715_s21  ;;  %v1877_v38 = vcombine.high %v1876_v28, %v1876_v28  ;;  %v1884_v42 = vrot.slane %v1876_v28, %v3202_v20 }
0x17fe   :  { %v1891_v43 = vrot.slane %v1877_v38, %v3202_v20 }
0x186e   :  { %v1305_v54 = vpop.permute.xlu0 %1304 }
0x186f   :  { %2467 = vmatmul.mubr.msk.bf16.vlgmr.msra.gmra.mrb[20].mxu1 %vm143_vm2, %v1305_v54 }
0x1870   :  { %2479 = vmatpush3.bf16.msra.mxu1 %v3112_v61  ;;  %2482 = vmatprep.mubr.msk.bf16.mxu1 %vm2712_vm0, %v2711_v1 }
0x1871   :  { %2480 = vmatprep.subr.bf16.mxu1 %v2711_v1 }
0x1874   :  { %2481 = vmatpush3.bf16.msra.mxu1 %v3122_v22 }
0x1875   :  { %2494 = vmatprep.subr.bf16.mxu1 %v2711_v1 }
0x1942   :  { %v1343_v3 = vpop.f32.mrb[20].mxu1 }
0x1943   :  { %v1359_v56 = vadd.f32 %v1343_v3, %v3164_v30  ;;  %v2468_v57 = vpop.f32.mrb[21].mxu1  ;;  %v1350_v62 = vrot.slane %v1343_v3, 6 }
0x1944   :  { %v1346_v58 = vpop.f32.mrb[22].mxu1 }
0x1945   :  { %v1361_v60 = vrot.slane %v1359_v56, 6  ;;  %v2469_v59 = vpop.f32.mrb[23].mxu1  ;;  %v1352_v63 = vadd.f32 %v1350_v62, %v3178_v34 }
0x1947   :  { %1362 = vrot.lane.b32.xlu1 %v1361_v60, %s2713_s0  ;;  %v2302_v2 = vmul.f32 -1.442695, %v1352_v63 }
0x1949   :  { %2645 = vpow2.f32 %v2302_v2 }
0x1953   :  { %v2646_v23 = vpop.eup %2645 }
0x1954   :  { %v1356_v4 = vadd.f32 1.0, %v2646_v23 }
0x1956   :  { %2647 = vrcp.f32 %v1356_v4 }
0x1960   :  { %v2648_v5 = vpop.eup %2647 }
0x1961   :  { %v1372_v17 = vsub.f32 1.0, %v2648_v5  ;;  %v1381_v26 = vmul.f32 %v2648_v5, %v1379_v24 }
0x19b9   :  { %v1363_v6 = vpop.permute.xlu1 %1362 }
0x19ba   :  { %v1365_v7 = vmul.f32 %v2648_v5, %v1363_v6 }
0x19bc   :  { %1367 = vrot.lane.b32.xlu0 %v1365_v7, %s2713_s0 }
0x1a2e   :  { %v1368_v8 = vpop.permute.xlu0 %1367 }
0x1a2f   :  { %v1370_v9 = vadd.f32 %v1368_v8, %v3178_v34 }
0x1a31   :  { %2649 = vtanh.f32 %v1370_v9 }
0x1a3b   :  { %v2650_v10 = vpop.eup %2649 }
0x1a3c   :  { %1374 = vrot.lane.b32.xlu1 %v2650_v10, %s2715_s21 }
0x1aae   :  { %v1375_v25 = vpop.permute.xlu1 %1374 }
0x1aaf   :  { %v1377_v19 = vmul.f32 %v1375_v25, %v1372_v17 }
0x1ab1   :  { %v1382_v27 = vadd.f32 %v1381_v26, %v1377_v19 }
0x1ab3   :  { %v1900_v29 = vrot.slane %v1382_v27, %v3202_v20  ;;  %v1383_v32 = vpack.c.bf16 %v1382_v27, %v1382_v27  ;;  %v1461_v23 = vrot.slane %v1382_v27, 6 }
0x1ab5   :  { %v1901_v47 = vcombine.high %v1900_v29, %v1900_v29  ;;  %v1908_v31 = vrot.slane %v1900_v29, %v3202_v20  ;;  %v1385_v35 = vrot.slane %v1383_v32, 1 }
0x1ab7   :  { %v1915_v39 = vrot.slane %v1901_v47, %v3202_v20  ;;  %v1916_v41 = vcombine.high %v1908_v31, %v1908_v31  ;;  %1386 = vrot.lane.b32.xlu0 %v1385_v35, %s2715_s21 }
0x1ab9   :  { %v1917_v36 = vcombine.high %v1915_v39, %v1915_v39  ;;  %v2064_v44 = vrot.slane %v1916_v41, %v3206_v33 }
0x1abb   :  { %v2068_v45 = vrot.slane %v1917_v36, %v3206_v33  ;;  %v2132_v46 = vsel %vm2131_vm10, %v1884_v42, %v2064_v44 }
0x1abd   :  { %v2133_v40 = vsel %vm2131_vm10, %v1891_v43, %v2068_v45 }
0x1b29   :  { %v1387_v48 = vpop.permute.xlu0 %1386 }
0x1b2a   :  { %2475 = vmatmul.mubr.msk.bf16.vlgmr.msra.gmra.mrb[24].mxu0 %vm143_vm2, %v1387_v48 }
0x1b2b   :  { %2487 = vmatpush3.bf16.msra.mxu0 %v3112_v61  ;;  %2490 = vmatprep.mubr.msk.bf16.mxu0 %vm2712_vm0, %v2711_v1 }
0x1b2c   :  { %2488 = vmatprep.subr.bf16.mxu0 %v2711_v1 }
0x1b2f   :  { %2489 = vmatpush3.bf16.msra.mxu0 %v3122_v22 }
0x1b30   :  { %2502 = vmatprep.subr.bf16.mxu0 %v2711_v1 }
0x1bfd   :  { %v1425_v49 = vpop.f32.mrb[24].mxu0 }
0x1bfe   :  { %v1441_v12 = vadd.f32 %v1425_v49, %v3164_v30  ;;  %v2476_v51 = vpop.f32.mrb[25].mxu0  ;;  %v1432_v0 = vrot.slane %v1425_v49, 4 }
0x1bff   :  { %v1428_v50 = vpop.f32.mrb[26].mxu0 }
0x1c00   :  { %v1443_v52 = vrot.slane %v1441_v12, 4  ;;  %v2477_v53 = vpop.f32.mrb[27].mxu0  ;;  %v1434_v55 = vadd.f32 %v1432_v0, %v3178_v34 }
0x1c02   :  { %1444 = vrot.lane.b32.xlu1 %v1443_v52, %s2713_s0  ;;  %v2304_v54 = vmul.f32 -1.442695, %v1434_v55 }
0x1c04   :  { %2651 = vpow2.f32 %v2304_v54 }
0x1c0e   :  { %v2652_v3 = vpop.eup %2651 }
0x1c0f   :  { %v1438_v56 = vadd.f32 1.0, %v2652_v3 }
0x1c11   :  { %2653 = vrcp.f32 %v1438_v56 }
0x1c1b   :  { %v2654_v57 = vpop.eup %2653 }
0x1c1c   :  { %v1454_v2 = vsub.f32 1.0, %v2654_v57  ;;  %v1463_v5 = vmul.f32 %v2654_v57, %v1461_v23 }
0x1c74   :  { %v1445_v58 = vpop.permute.xlu1 %1444 }
0x1c75   :  { %v1447_v60 = vmul.f32 %v2654_v57, %v1445_v58 }
0x1c77   :  { %1449 = vrot.lane.b32.xlu0 %v1447_v60, %s2713_s0 }
0x1ce9   :  { %v1450_v59 = vpop.permute.xlu0 %1449 }
0x1cea   :  { %v1452_v62 = vadd.f32 %v1450_v59, %v3178_v34 }
0x1cec   :  { %2655 = vtanh.f32 %v1452_v62 }
0x1cf6   :  { %v2656_v63 = vpop.eup %2655 }
0x1cf7   :  { %1456 = vrot.lane.b32.xlu1 %v2656_v63, %s2715_s21 }
0x1d69   :  { %v1457_v4 = vpop.permute.xlu1 %1456 }
0x1d6a   :  { %v1459_v6 = vmul.f32 %v1457_v4, %v1454_v2 }
0x1d6c   :  { %v1464_v7 = vadd.f32 %v1463_v5, %v1459_v6 }
0x1d6e   :  { %v1918_v8 = vcombine.high %v1464_v7, %v1464_v7  ;;  %v1465_v9 = vpack.c.bf16 %v1464_v7, %v1464_v7  ;;  %v1543_v48 = vrot.slane %v1464_v7, 6 }
0x1d70   :  { %v1925_v10 = vrot.slane %v1918_v8, %v3202_v20  ;;  %v1467_v11 = vrot.slane %v1465_v9, 2 }
0x1d72   :  { %v1926_v13 = vcombine.high %v1925_v10, %v1925_v10  ;;  %v1933_v14 = vrot.slane %v1925_v10, %v3202_v20  ;;  %1468 = vrot.lane.b32.xlu0 %v1467_v11, %s2715_s21 }
0x1d74   :  { %v1940_v15 = vrot.slane %v1926_v13, %v3202_v20  ;;  %v2074_v16 = vrot.slane %v1933_v14, %v3206_v33 }
0x1d76   :  { %v2078_v17 = vrot.slane %v1940_v15, %v3206_v33  ;;  %v2134_v24 = vsel %vm1130_vm5, %v2132_v46, %v2074_v16 }
0x1d78   :  { %v2135_v25 = vsel %vm1130_vm5, %v2133_v40, %v2078_v17 }
0x1de4   :  { %v1469_v26 = vpop.permute.xlu0 %1468 }
0x1de5   :  { %2483 = vmatmul.mubr.msk.bf16.vlgmr.msra.gmra.mrb[24].mxu1 %vm143_vm2, %v1469_v26 }
0x1de6   :  { %2495 = vmatpush3.bf16.msra.mxu1 %v3112_v61  ;;  %2498 = vmatprep.mubr.msk.bf16.mxu1 %vm2712_vm0, %v2711_v1 }
0x1de7   :  { %2496 = vmatprep.subr.bf16.mxu1 %v2711_v1 }
0x1dea   :  { %2497 = vmatpush3.bf16.msra.mxu1 %v3122_v22 }
0x1deb   :  { %2510 = vmatprep.subr.bf16.mxu1 %v2711_v1 }
0x1eb8   :  { %v1507_v19 = vpop.f32.mrb[24].mxu1 }
0x1eb9   :  { %v1523_v27 = vadd.f32 %v1507_v19, %v3164_v30  ;;  %v2484_v28 = vpop.f32.mrb[25].mxu1  ;;  %v1514_v31 = vrot.slane %v1507_v19, 2 }
0x1eba   :  { %v1510_v29 = vpop.f32.mrb[26].mxu1 }
0x1ebb   :  { %v1525_v32 = vrot.slane %v1523_v27, 2  ;;  %v2485_v47 = vpop.f32.mrb[27].mxu1  ;;  %v1516_v35 = vadd.f32 %v1514_v31, %v3178_v34 }
0x1ebd   :  { %1526 = vrot.lane.b32.xlu1 %v1525_v32, %s2713_s0  ;;  %v2306_v38 = vmul.f32 -1.442695, %v1516_v35 }
0x1ebf   :  { %2657 = vpow2.f32 %v2306_v38 }
0x1ec9   :  { %v2658_v39 = vpop.eup %2657 }
0x1eca   :  { %v1520_v41 = vadd.f32 1.0, %v2658_v39 }
0x1ecc   :  { %2659 = vrcp.f32 %v1520_v41 }
0x1ed6   :  { %v2660_v42 = vpop.eup %2659 }
0x1ed7   :  { %v1536_v40 = vsub.f32 1.0, %v2660_v42  ;;  %v1545_v12 = vmul.f32 %v2660_v42, %v1543_v48 }
0x1f2f   :  { %v1527_v36 = vpop.permute.xlu1 %1526 }
0x1f30   :  { %v1529_v44 = vmul.f32 %v2660_v42, %v1527_v36 }
0x1f32   :  { %1531 = vrot.lane.b32.xlu0 %v1529_v44, %s2713_s0 }
0x1fa4   :  { %v1532_v43 = vpop.permute.xlu0 %1531 }
0x1fa5   :  { %v1534_v45 = vadd.f32 %v1532_v43, %v3178_v34 }
0x1fa7   :  { %2661 = vtanh.f32 %v1534_v45 }
0x1fb1   :  { %v2662_v46 = vpop.eup %2661 }
0x1fb2   :  { %1538 = vrot.lane.b32.xlu1 %v2662_v46, %s2715_s21 }
0x2024   :  { %v1539_v49 = vpop.permute.xlu1 %1538 }
0x2025   :  { %v1541_v51 = vmul.f32 %v1539_v49, %v1536_v40 }
0x2027   :  { %v1546_v50 = vadd.f32 %v1545_v12, %v1541_v51 }
0x2029   :  { %v1941_v52 = vcombine.high %v1546_v50, %v1546_v50  ;;  %v1547_v53 = vpack.c.bf16 %v1546_v50, %v1546_v50 }
0x202b   :  { %v1948_v0 = vrot.slane %v1941_v52, %v3202_v20  ;;  %v1549_v55 = vrot.slane %v1547_v53, 3 }
0x202d   :  { %v1949_v54 = vcombine.high %v1948_v0, %v1948_v0  ;;  %v1956_v3 = vrot.slane %v1948_v0, %v3202_v20  ;;  %1550 = vrot.lane.b32.xlu0 %v1549_v55, %s2715_s21 }
0x202f   :  { %v1963_v34 = vrot.slane %v1949_v54, %v3202_v20  ;;  %v1964_v56 = vcombine.high %v1956_v3, %v1956_v3 }
0x2031   :  { %v1965_v57 = vcombine.high %v1963_v34, %v1963_v34  ;;  %v2084_v58 = vrot.slane %v1964_v56, %v3206_v33 }
0x2033   :  { %v2088_v60 = vrot.slane %v1965_v57, %v3206_v33  ;;  %v2137_v59 = vsel %vm2136_vm11, %v2134_v24, %v2084_v58 }
0x2035   :  { %v2138_v62 = vsel %vm2136_vm11, %v2135_v25, %v2088_v60  ;;  %v1621_v25 = vrot.slane %v1546_v50, 6 }
0x209f   :  { %v1551_v63 = vpop.permute.xlu0 %1550 }
0x20a0   :  { %2491 = vmatmul.mubr.msk.bf16.vlgmr.msra.gmra.mrb[28].mxu0 %vm143_vm2, %v1551_v63 }
0x20a1   :  { %2503 = vmatpush3.bf16.msra.mxu0 %v3112_v61  ;;  %2506 = vmatprep.mubr.msk.bf16.mxu0 %vm2712_vm0, %v2711_v1 }
0x20a2   :  { %2504 = vmatprep.subr.bf16.mxu0 %v2711_v1 }
0x20a5   :  { %2505 = vmatpush3.bf16.msra.mxu0 %v3122_v22 }
0x20a6   :  { %2518 = vmatprep.subr.bf16.mxu0 %v2711_v1 }
0x2173   :  { %v1589_v2 = vpop.f32.mrb[28].mxu0 }
0x2174   :  { %v1602_v23 = vadd.f32 %v1589_v2, %v3164_v30  ;;  %v2492_v4 = vpop.f32.mrb[29].mxu0  ;;  %v1595_v7 = vadd.f32 %v1589_v2, %v3180_v37 }
0x2175   :  { %v1592_v5 = vpop.f32.mrb[30].mxu0 }
0x2176   :  { %1604 = vrot.lane.b32.xlu1 %v1602_v23, %s2713_s0  ;;  %v2493_v6 = vpop.f32.mrb[31].mxu0  ;;  %v2308_v8 = vmul.f32 -1.442695, %v1595_v7 }
0x2178   :  { %2663 = vpow2.f32 %v2308_v8 }
0x2182   :  { %v2664_v9 = vpop.eup %2663 }
0x2183   :  { %v1599_v10 = vadd.f32 1.0, %v2664_v9 }
0x2185   :  { %2665 = vrcp.f32 %v1599_v10 }
0x218f   :  { %v2666_v11 = vpop.eup %2665 }
0x2190   :  { %v1614_v24 = vsub.f32 1.0, %v2666_v11  ;;  %v1623_v19 = vmul.f32 %v2666_v11, %v1621_v25 }
0x21e8   :  { %v1605_v13 = vpop.permute.xlu1 %1604 }
0x21e9   :  { %v1607_v14 = vmul.f32 %v2666_v11, %v1605_v13 }
0x21eb   :  { %1609 = vrot.lane.b32.xlu0 %v1607_v14, %s2713_s0 }
0x225d   :  { %v1610_v15 = vpop.permute.xlu0 %1609 }
0x225e   :  { %v1612_v16 = vadd.f32 %v1610_v15, %v3180_v37 }
0x2260   :  { %2667 = vtanh.f32 %v1612_v16 }
0x226a   :  { %v2668_v17 = vpop.eup %2667 }
0x226b   :  { %1616 = vrot.lane.b32.xlu1 %v2668_v17, %s2715_s21 }
0x22dd   :  { %v1617_v26 = vpop.permute.xlu1 %1616 }
0x22de   :  { %v1619_v27 = vmul.f32 %v1617_v26, %v1614_v24 }
0x22e0   :  { %v1624_v28 = vadd.f32 %v1623_v19, %v1619_v27 }
0x22e2   :  { %v1972_v29 = vrot.slane %v1624_v28, %v3202_v20  ;;  %v1625_v32 = vpack.c.bf16 %v1624_v28, %v1624_v28  ;;  %v1702_v34 = vrot.slane %v1624_v28, 6 }
0x22e4   :  { %v1973_v47 = vcombine.high %v1972_v29, %v1972_v29  ;;  %v1980_v31 = vrot.slane %v1972_v29, %v3202_v20  ;;  %1627 = vrot.lane.b32.xlu0 %v1625_v32, %s2715_s21 }
0x22e6   :  { %v1987_v35 = vrot.slane %v1973_v47, %v3202_v20  ;;  %v2094_v38 = vrot.slane %v1980_v31, %v3206_v33 }
0x22e8   :  { %v2098_v39 = vrot.slane %v1987_v35, %v3206_v33  ;;  %v2139_v41 = vsel %vm1132_vm7, %v2137_v59, %v2094_v38 }
0x22ea   :  { %v2140_v42 = vsel %vm1132_vm7, %v2138_v62, %v2098_v39 }
0x2356   :  { %v1628_v36 = vpop.permute.xlu0 %1627 }
0x2357   :  { %2499 = vmatmul.mubr.msk.bf16.vlgmr.msra.gmra.mrb[28].mxu1 %vm143_vm2, %v1628_v36 }
0x2358   :  { %2511 = vmatpush3.bf16.msra.mxu1 %v3112_v61  ;;  %2514 = vmatprep.mubr.msk.bf16.mxu1 %vm2712_vm0, %v2711_v1 }
0x2359   :  { %2512 = vmatprep.subr.bf16.mxu1 %v2711_v1 }
0x235c   :  { %2513 = vmatpush3.bf16.msra.mxu1 %v3122_v22 }
0x242a   :  { %v1666_v44 = vpop.f32.mrb[28].mxu1 }
0x242b   :  { %v1682_v43 = vadd.f32 %v1666_v44, %v3164_v30  ;;  %v2500_v45 = vpop.f32.mrb[29].mxu1  ;;  %v1673_v49 = vrot.slane %v1666_v44, 6 }
0x242c   :  { %v1669_v46 = vpop.f32.mrb[30].mxu1 }
0x242d   :  { %v1684_v40 = vrot.slane %v1682_v43, 6  ;;  %v2501_v48 = vpop.f32.mrb[31].mxu1  ;;  %v1675_v12 = vadd.f32 %v1673_v49, %v3180_v37 }
0x242f   :  { %1685 = vrot.lane.b32.xlu1 %v1684_v40, %s2713_s0  ;;  %v2310_v61 = vmul.f32 -1.442695, %v1675_v12 }
0x2431   :  { %2669 = vpow2.f32 %v2310_v61 }
0x243b   :  { %v2670_v51 = vpop.eup %2669 }
0x243c   :  { %v1679_v50 = vadd.f32 1.0, %v2670_v51 }
0x243e   :  { %2671 = vrcp.f32 %v1679_v50 }
0x2448   :  { %v2672_v52 = vpop.eup %2671 }
0x2449   :  { %v1695_v3 = vsub.f32 1.0, %v2672_v52  ;;  %v1704_v57 = vmul.f32 %v2672_v52, %v1702_v34 }
0x24a1   :  { %v1686_v53 = vpop.permute.xlu1 %1685 }
0x24a2   :  { %v1688_v22 = vmul.f32 %v2672_v52, %v1686_v53 }
0x24a4   :  { %1690 = vrot.lane.b32.xlu0 %v1688_v22, %s2713_s0 }
0x2516   :  { %v1691_v0 = vpop.permute.xlu0 %1690 }
0x2517   :  { %v1693_v55 = vadd.f32 %v1691_v0, %v3180_v37 }
0x2519   :  { %2673 = vtanh.f32 %v1693_v55 }
0x2523   :  { %v2674_v54 = vpop.eup %2673 }
0x2524   :  { %1697 = vrot.lane.b32.xlu1 %v2674_v54, %s2715_s21 }
0x2596   :  { %v1698_v56 = vpop.permute.xlu1 %1697 }
0x2597   :  { %v1700_v58 = vmul.f32 %v1698_v56, %v1695_v3 }
0x2599   :  { %v1705_v60 = vadd.f32 %v1704_v57, %v1700_v58 }
0x259b   :  { %v1994_v59 = vrot.slane %v1705_v60, %v3202_v20  ;;  %v1706_v62 = vpack.c.bf16 %v1705_v60, %v1705_v60 }
0x259d   :  { %v1995_v63 = vcombine.high %v1994_v59, %v1994_v59  ;;  %v2002_v2 = vrot.slane %v1994_v59, %v3202_v20  ;;  %v1708_v23 = vrot.slane %v1706_v62, 1 }
0x259f   :  { %v2009_v4 = vrot.slane %v1995_v63, %v3202_v20  ;;  %v2010_v5 = vcombine.high %v2002_v2, %v2002_v2  ;;  %1709 = vrot.lane.b32.xlu0 %v1708_v23, %s2715_s21 }
0x25a1   :  { %v2011_v6 = vcombine.high %v2009_v4, %v2009_v4  ;;  %v2104_v7 = vrot.slane %v2010_v5, %v3206_v33 }
0x25a3   :  { %v2108_v8 = vrot.slane %v2011_v6, %v3206_v33  ;;  %v2142_v9 = vsel %vm2141_vm12, %v2139_v41, %v2104_v7  ;;  %v1784_v41 = vrot.slane %v1705_v60, 6  ;;  %v2541_v6 = vld [vmem:[%s3370_s10] sm:$0xff]   ;;  %v2542_v7 = vld [vmem:[%s3370_s10 + $0x8] sm:$0xff]   ;;  %s2717_s10 = smov [#allocation2]  }
0x25a4   :  { %s2247_s17 = sshll.u32 %s2717_s10, 4  ;;  %s2248_s17 = int_to_ptr.vmem [resolvable:$true] %s2247_s17 }
0x25a5   :  { %v2143_v10 = vsel %vm2141_vm12, %v2140_v42, %v2108_v8  ;;  %s2687_s18 = scalar_lea.vmem %s2248_s17, 64  ;;  %p2692_p1 = scmp.lt.s32.totalorder %s2248_s17, %s2248_s17 }
0x25a6   :  { %p2688_p0 = scmp.ne.s32.totalorder %s2248_s17, %s2687_s18  ;;  %p2693_p2 = scmp.lt.s32.totalorder %s2687_s18, %s2687_s18 }
0x25a8   :  { %p2694_p3 = por %p2693_p2, %p2692_p1 }
0x25aa   :  { %p2695_p4 = pnand %p2694_p3, %p2688_p0 }
0x2611   :  { %v1710_v11 = vpop.permute.xlu0 %1709 }
0x2612   :  { %2507 = vmatmul.mubr.msk.bf16.vlgmr.msra.gmra.mrb[32].mxu0 %vm143_vm2, %v1710_v11 }
0x2613   :  { %2522 = vmatprep.mubr.msk.bf16.mxu0 %vm2712_vm0, %v2711_v1  ;;  %2519 = vmatpush3.bf16.msra.mxu0 %v2541_v6  ;;  %vm2232_vm0 = vcmask 253952  }
0x2614   :  { %2520 = vmatprep.subr.bf16.mxu0 %v2711_v1 }
0x2617   :  { %2521 = vmatpush3.bf16.msra.mxu0 %v2542_v7 }
0x26e5   :  { %v1748_v13 = vpop.f32.mrb[32].mxu0 }
0x26e6   :  { %v1764_v14 = vadd.f32 %v1748_v13, %v3164_v30  ;;  %v2508_v15 = vpop.f32.mrb[33].mxu0  ;;  %v1755_v25 = vrot.slane %v1748_v13, 4 }
0x26e7   :  { %v1751_v16 = vpop.f32.mrb[34].mxu0 }
0x26e8   :  { %v1766_v17 = vrot.slane %v1764_v14, 4  ;;  %v2509_v24 = vpop.f32.mrb[35].mxu0  ;;  %v1757_v26 = vadd.f32 %v1755_v25, %v3180_v37 }
0x26ea   :  { %1767 = vrot.lane.b32.xlu1 %v1766_v17, %s2713_s0  ;;  %v2312_v19 = vmul.f32 -1.442695, %v1757_v26 }
0x26ec   :  { %2675 = vpow2.f32 %v2312_v19 }
0x26f6   :  { %v2676_v27 = vpop.eup %2675 }
0x26f7   :  { %v1761_v28 = vadd.f32 1.0, %v2676_v27 }
0x26f9   :  { %2677 = vrcp.f32 %v1761_v28 }
0x2703   :  { %v2678_v29 = vpop.eup %2677 }
0x2704   :  { %v1777_v39 = vsub.f32 1.0, %v2678_v29  ;;  %v1786_v36 = vmul.f32 %v2678_v29, %v1784_v41 }
0x275c   :  { %v1768_v32 = vpop.permute.xlu1 %1767 }
0x275d   :  { %v1770_v47 = vmul.f32 %v2678_v29, %v1768_v32  ;;  %v2223_v32 = vrot.slane %v3155_v21, 7 }
0x275f   :  { %1772 = vrot.lane.b32.xlu0 %v1770_v47, %s2713_s0 }
0x27d1   :  { %v1773_v31 = vpop.permute.xlu0 %1772 }
0x27d2   :  { %v1775_v35 = vadd.f32 %v1773_v31, %v3180_v37 }
0x27d4   :  { %2679 = vtanh.f32 %v1775_v35 }
0x27de   :  { %v2680_v38 = vpop.eup %2679 }
0x27df   :  { %1779 = vrot.lane.b32.xlu1 %v2680_v38, %s2715_s21 }
0x2851   :  { %v1780_v42 = vpop.permute.xlu1 %1779 }
0x2852   :  { %v1782_v44 = vmul.f32 %v1780_v42, %v1777_v39 }
0x2854   :  { %v1787_v43 = vadd.f32 %v1786_v36, %v1782_v44 }
0x2856   :  { %v2012_v45 = vcombine.high %v1787_v43, %v1787_v43  ;;  %v1788_v46 = vpack.c.bf16 %v1787_v43, %v1787_v43  ;;  %v1866_v8 = vrot.slane %v1787_v43, 6 }
0x2858   :  { %v2019_v40 = vrot.slane %v2012_v45, %v3202_v20  ;;  %v1790_v48 = vrot.slane %v1788_v46, 2 }
0x285a   :  { %v2020_v49 = vcombine.high %v2019_v40, %v2019_v40  ;;  %v2027_v12 = vrot.slane %v2019_v40, %v3202_v20  ;;  %1791 = vrot.lane.b32.xlu0 %v1790_v48, %s2715_s21 }
0x285c   :  { %v2034_v61 = vrot.slane %v2020_v49, %v3202_v20  ;;  %v2114_v51 = vrot.slane %v2027_v12, %v3206_v33 }
0x285e   :  { %v2118_v50 = vrot.slane %v2034_v61, %v3206_v33  ;;  %v2144_v52 = vsel %vm1134_vm9, %v2142_v9, %v2114_v51 }
0x2860   :  { %v2145_v53 = vsel %vm1134_vm9, %v2143_v10, %v2118_v50 }
0x28cc   :  { %v1792_v22 = vpop.permute.xlu0 %1791 }
0x28cd   :  { %2515 = vmatmul.mubr.msk.bf16.vlgmr.msra.gmra.mrb[32].mxu1 %vm143_vm2, %v1792_v22 }
0x29a0   :  { %v1830_v0 = vpop.f32.mrb[32].mxu1 }
0x29a1   :  { %v1846_v55 = vadd.f32 %v1830_v0, %v3164_v30  ;;  %v2516_v54 = vpop.f32.mrb[33].mxu1  ;;  %v1837_v57 = vrot.slane %v1830_v0, 2 }
0x29a2   :  { %v1833_v3 = vpop.f32.mrb[34].mxu1 }
0x29a3   :  { %v1848_v34 = vrot.slane %v1846_v55, 2  ;;  %v2517_v56 = vpop.f32.mrb[35].mxu1  ;;  %v1839_v58 = vadd.f32 %v1837_v57, %v3180_v37 }
0x29a5   :  { %1849 = vrot.lane.b32.xlu1 %v1848_v34, %s2713_s0  ;;  %v2314_v60 = vmul.f32 -1.442695, %v1839_v58 }
0x29a7   :  { %2681 = vpow2.f32 %v2314_v60 }
0x29b1   :  { %v2682_v59 = vpop.eup %2681 }
0x29b2   :  { %v1843_v62 = vadd.f32 1.0, %v2682_v59 }
0x29b4   :  { %2683 = vrcp.f32 %v1843_v62 }
0x29be   :  { %v2684_v63 = vpop.eup %2683 }
0x29bf   :  { %v1868_v10 = vmul.f32 %v2684_v63, %v1866_v8 }
0x2a17   :  { %v1850_v2 = vpop.permute.xlu1 %1849 }
0x2a18   :  { %v1852_v23 = vmul.f32 %v2684_v63, %v1850_v2 }
0x2a1a   :  { %1854 = vrot.lane.b32.xlu0 %v1852_v23, %s2713_s0 }
0x2a8c   :  { %v1855_v30 = vpop.permute.xlu0 %1854 }
0x2a8d   :  { %v1857_v4 = vadd.f32 %v1855_v30, %v3180_v37  ;;  %v1859_v37 = vsub.f32 1.0, %v2684_v63 }
0x2a8f   :  { %2685 = vtanh.f32 %v1857_v4 }
0x2a99   :  { %v2686_v5 = vpop.eup %2685 }
0x2a9a   :  { %1861 = vrot.lane.b32.xlu1 %v2686_v5, %s2715_s21 }
0x2a9e   :  { %2224 = vrot.lane.b32.xlu1 %v3153_v18, %s2715_s21 }
0x2b0c   :  { %v1862_v9 = vpop.permute.xlu1 %1861 }
0x2b0d   :  { %v1864_v11 = vmul.f32 %v1862_v9, %v1859_v37 }
0x2b0f   :  { %v1869_v13 = vadd.f32 %v1868_v10, %v1864_v11 }
0x2b10   :  { %v2225_v18 = vpop.permute.xlu1 %2224 }
0x2b11   :  { %v2036_v14 = vcombine.high %v1869_v13, %v1869_v13  ;;  %2231 = vst.msk [vmem:[#allocation2 - $0x7] sm:$0x80] %vm2230_vm13, %v2225_v18  ;;  %2234 = vrot.lane.b32.xlu1 %v1869_v13, %s2715_s21 }
0x2b13   :  { %v2043_v15 = vrot.slane %v2036_v14, %v3202_v20 }
0x2b15   :  { %v2044_v16 = vcombine.high %v2043_v15, %v2043_v15  ;;  %v2051_v17 = vrot.slane %v2043_v15, %v3202_v20 }
0x2b17   :  { %v2058_v1 = vrot.slane %v2044_v16, %v3202_v20  ;;  %v2059_v24 = vcombine.high %v2051_v17, %v2051_v17 }
0x2b19   :  { %v2060_v25 = vcombine.high %v2058_v1, %v2058_v1  ;;  %v2124_v26 = vrot.slane %v2059_v24, %v3206_v33 }
0x2b1b   :  { %v2128_v19 = vrot.slane %v2060_v25, %v3206_v33  ;;  %v2147_v27 = vsel %vm2146_vm14, %v2144_v52, %v2124_v26 }
0x2b1d   :  { %v2148_v28 = vsel %vm2146_vm14, %v2145_v53, %v2128_v19 }
0x2b1e   :  { %v2149_v29 = vpack.c.bf16 %v2148_v28, %v2147_v27 }
0x2b20   :  { %2162 = vrot.lane.b32.xlu0 %v2149_v29, %s2715_s21 }
0x2b24   :  { %2226 = vrot.lane.b32.xlu0 %v2223_v32, %s2715_s21 }
0x2b83   :  { %v2235_v47 = vpop.permute.xlu1 %2234 }
0x2b84   :  { %2239 = vst.msk [vmem:[#allocation2 - $0x4] sm:$0xc0] %vm2238_vm15, %v2235_v47 }
0x2b92   :  { %v2163_v20 = vpop.permute.xlu0 %2162 }
0x2b93   :  { %2523 = vmatmul.mubr.msk.bf16.vlgmr.msra.gmra.mrb[36].mxu0 %vm143_vm2, %v2163_v20 }
0x2b96   :  { %v2227_v31 = vpop.permute.xlu0 %2226 }
0x2b97   :  { %2233 = vst.msk [vmem:[#allocation2 + $0x1] sm:$0x1] %vm2232_vm0, %v2227_v31 }
0x2b98   :  { %2698 = shalt.err (!%p2695_p4)
}
0x2b99   :  { %s2699_s0 = scalar_lea.hbm %s3373_s13, 64 }
0x2b9a   :  { %p2700_p5 = scmp.ne.s32.totalorder %s3373_s13, %s2699_s0  ;;  %p2703_p6 = scmp.lt.u32.totalorder %s2699_s0, %s3373_s13 }
0x2b9c   :  { %p2705_p7 = pnand %p2703_p6, %p2700_p5 }
0x2b9e   :  { %2708 = shalt.err (!%p2705_p7)
}
0x2b9f   :  { %s2718_s23 = smov 2   ;;  %v2315_v21 = vld [vmem:[%s3371_s11] ss:$0 sm:$0xff]  ;;  %vm2220_vm1 = vcmask 80896  }
0x2ba0   :  { %2253 = dma.vmem_to_hbm [thread:$0]  %s2248_s17, 64, %s3373_s13, [#allocation3], %s2714_s6, %s2714_s6, %s2718_s23  }
0x2c66   :  { %v2213_v33 = vpop.f32.mrb[36].mxu0 }
0x2c67   :  { %v2214_v35 = vadd.f32 %v2315_v21, %v2213_v33  ;;  %v2524_v38 = vpop.f32.mrb[37].mxu0 }
0x2c68   :  { %v2216_v39 = vpop.f32.mrb[38].mxu0 }
0x2c69   :  { %2221 = vst.msk [vmem:[%s3372_s12] sm:$0xff] %vm2220_vm1, %v2214_v35  ;;  %v2217_v41 = vadd.f32 %v2315_v21, %v2216_v39  ;;  %v2525_v42 = vpop.f32.mrb[39].mxu0 }
0x2c6b   :  { %2222 = vst.msk [vmem:[%s3372_s12 + $0x8] sm:$0xff] %vm2220_vm1, %v2217_v41 }
0x2c6c   :  { %2709 = dma.done.wait [#allocation3], 64  }
0x2c6d   :  { %2710 = vsyncadd [#allocation3], 4294967232 }
0x2c6e   :  { %2259 = vsyncpa [#allocation3], 1 }

</bundles_post_ra>
